<compile_context>
chip_gen: v5e
topology: v5e:2x2
jax: 0.10.0
libtpu: 0.0.40
codegen_flags: <defaults>
</compile_context>

<pallas_src>
import jax
import jax.numpy as jnp
import numpy as np
from jax.experimental import pallas as pl
from jax.experimental.pallas import tpu as pltpu


def _make_fused_idwt_kernel(max_rank):
    """Kernel over refs: [a0, (d, M_stacked, bias) * max_rank, out]."""

    def kernel(*refs):
        a0_ref = refs[0]
        o_ref = refs[-1]
        lvl_refs = refs[1:-1]
        a = a0_ref[...]                               # (B, CD*L0) bf16, value-resident cA
        y = None
        for lv in range(max_rank):
            d_ref, m_ref, b_ref = lvl_refs[3 * lv: 3 * lv + 3]
            # Nearest-x2 upsample + 'same' zero pad + per-tap shift + Conv1d
            # channel mixing for BOTH branches are folded into one stacked
            # operator -> a single lane-aligned bf16 matmul per level.
            x = jnp.concatenate([a, d_ref[...]], axis=-1)          # bf16, lane-aligned halves
            y = jnp.dot(x, m_ref[...], preferred_element_type=jnp.float32)
            y = y + b_ref[...]                        # (1, CD*Lout) f32 bias row, bcast over B
            # Fused global normalization, single pass (unbiased std, no eps,
            # matching torch.std); kept entirely in f32 on the in-register result.
            n = y.size
            s1 = jnp.sum(y)
            s2 = jnp.sum(y * y)
            var = (s2 - s1 * s1 / n) / (n - 1)
            y = y * jax.lax.rsqrt(var)
            a = y.astype(jnp.bfloat16)                # bf16 operand for the next level's dot
        o_ref[...] = y.astype(o_ref.dtype)

    return kernel


def _tap_gather_matrix(Lout, K, pad, L_in, Ld):
    """G[t, k, m] == 1 iff tap k of the 'same'-padded conv at output position t
    reads element m of the (truncated-to-Ld, nearest-x2-upsampled) input."""
    G = np.zeros((Lout, K, L_in), np.float32)
    for t in range(Lout):
        for k in range(K):
            j = t + k - pad                 # position in the upsampled signal
            if 0 <= j < Lout:
                m = j // 2                  # nearest-neighbour upsample source
                if m < Ld:                  # truncation cA[:, :, :Ld]
                    G[t, k, m] = 1.0
    return G


def _level_operator(G, w):
    """Fold gather G (Lout, K, L_in) and conv taps w (K, Cin, Cout) into the
    dense channel-major operator of shape (Cin*L_in, Cout*Lout)."""
    Lout, _, L_in = G.shape
    Cin, Cout = w.shape[1], w.shape[2]
    M = jnp.einsum('tkm,kio->imot', jnp.asarray(G), w,
                   precision=jax.lax.Precision.HIGHEST)
    return M.reshape(Cin * L_in, Cout * Lout)


def build_idwt_operators(wlp, blp, whp, bhp, *, CD, L0, detail_lengths):
    """Precompute the per-level stacked operators and bias rows.

    Call once per weight update (inference: once); the per-forward path then
    only moves ~KB of activations plus the cached operators through the kernel.
    detail_lengths is ordered as processed: coarsest detail first.
    """
    K = wlp.shape[0]
    pad = (K - 1) // 2
    bias = blp + bhp
    ops = []
    L_in = L0
    for Ld in detail_lengths:
        Lout = 2 * Ld
        M_lp = _level_operator(_tap_gather_matrix(Lout, K, pad, L_in, Ld), wlp)
        M_hp = _level_operator(_tap_gather_matrix(Lout, K, pad, Ld, Ld), whp)
        # stacked (CD*(L_in+Ld), CD*Lout) operator, bf16 (halves HBM/DMA bytes
        # and uses the native bf16 MXU path; dots still accumulate in f32).
        M = jnp.concatenate([M_lp, M_hp], axis=0).astype(jnp.bfloat16)
        b_row = jnp.repeat(bias, Lout).reshape(1, CD * Lout).astype(jnp.float32)
        ops.append((M, b_row))
        L_in = Lout
    return ops


def idwt_apply(cA, detail_coefficients, ops):
    """Run the fused kernel with prebuilt operators."""
    max_rank = len(detail_coefficients)
    B, _, C, D = detail_coefficients[-1].shape
    CD = C * D

    # channel-major flat layout == the same byte reinterpretation torch's
    # cA.reshape(B, C*D, -1) performs on a contiguous tensor (no transpose).
    a_flat = cA.reshape(B, -1).astype(jnp.bfloat16)

    inputs = [a_flat]
    L_final = None
    for lv in range(max_rank):
        d = detail_coefficients[-lv - 1]
        Ld = d.size // (B * CD)
        inputs.append(d.reshape(B, CD * Ld).astype(jnp.bfloat16))
        M, b_row = ops[lv]
        inputs.append(M)
        inputs.append(b_row)
        L_final = 2 * Ld

    out_shape = jax.ShapeDtypeStruct((B, CD * L_final), cA.dtype)

    # Explicit scoped-VMEM budget: the whole-array layout must not be rejected
    # by the default limit when L grows (re-derive tiling before v7x's 64 MiB).
    nbytes = sum(int(np.prod(x.shape)) * np.dtype(x.dtype).itemsize for x in inputs)
    nbytes += int(np.prod(out_shape.shape)) * np.dtype(out_shape.dtype).itemsize
    vmem_limit = int(min(128 * 1024 * 1024, max(16 * 1024 * 1024, 4 * nbytes)))

    out = pl.pallas_call(
        _make_fused_idwt_kernel(max_rank),
        out_shape=out_shape,
        in_specs=[pl.BlockSpec(memory_space=pltpu.MemorySpace.VMEM)] * len(inputs),
        out_specs=pl.BlockSpec(memory_space=pltpu.MemorySpace.VMEM),
        compiler_params=pltpu.CompilerParams(vmem_limit_bytes=vmem_limit),
    )(*inputs)
    # (B, CD*Lfinal) flat -> (B, -1, C, D): same byte reinterpretation as torch
    return out.reshape(B, -1, C, D)


def idwt_forward(cA, detail_coefficients, wlp, blp, whp, bhp):
    """Mirrors IDWT.forward (the non-legendre/chebyshev Conv1d branch)."""
    B, _, C, D = detail_coefficients[-1].shape
    CD = C * D
    L0 = cA.size // (B * CD)
    detail_lengths = [d.size // (B * CD) for d in reversed(detail_coefficients)]
    ops = build_idwt_operators(wlp, blp, whp, bhp,
                               CD=CD, L0=L0, detail_lengths=detail_lengths)
    return idwt_apply(cA, detail_coefficients, ops)


def _ref_forward(cA, detail_coefficients, wlp, blp, whp, bhp):
    """Pure-JAX f32 reference with identical math, for validation."""
    max_rank = len(detail_coefficients)
    B, _, C, D = detail_coefficients[-1].shape
    CD = C * D
    K = wlp.shape[0]
    pad = (K - 1) // 2
    cA = cA.reshape(B, CD, -1)

    def conv1d(x, w, b):  # x: (B, CD, L) torch-style NCW conv, 'same' padding
        xt = jnp.transpose(x, (0, 2, 1))
        L = xt.shape[1]
        xp = jnp.pad(xt, ((0, 0), (pad, pad), (0, 0)))
        y = sum(jnp.einsum('blc,co->blo', xp[:, k:k + L, :], w[k],
                           precision=jax.lax.Precision.HIGHEST)
                for k in range(K)) + b
        return jnp.transpose(y, (0, 2, 1))

    for lv in range(max_rank):
        rc = detail_coefficients[-lv - 1].reshape(B, CD, -1)
        Ld = rc.shape[2]
        cA = cA[:, :, :Ld]
        cAu = jnp.repeat(cA, 2, axis=2)
        cDu = jnp.repeat(rc, 2, axis=2)
        y = conv1d(cAu, wlp, blp) + conv1d(cDu, whp, bhp)
        n = y.size
        std = jnp.sqrt(jnp.sum((y - jnp.mean(y)) ** 2) / (n - 1))
        cA = y / std
    return cA.reshape(B, -1, C, D)


if __name__ == "__main__":
    # module config: IDWT(filter_initialization='conv', filter_size=3, c=4, ich=8)
    c, ich, K = 4, 8, 3
    C, D = 4, 8                      # C * D must equal ich * c (Conv1d channels)
    CD = C * D
    assert CD == ich * c
    B = 2

    key = jax.random.PRNGKey(0)
    k1, k2, k3, k4, k5, k6, k7 = jax.random.split(key, 7)
    bound = 1.0 / np.sqrt(CD * K)
    # torch Conv1d weight layout is (out, in, K); we store per-tap (K, in, out)
    w_lp_t = jax.random.uniform(k1, (CD, CD, K), jnp.float32, -bound, bound)
    w_hp_t = jax.random.uniform(k2, (CD, CD, K), jnp.float32, -bound, bound)
    wlp = jnp.transpose(w_lp_t, (2, 1, 0))
    whp = jnp.transpose(w_hp_t, (2, 1, 0))
    blp = jax.random.uniform(k3, (CD,), jnp.float32, -bound, bound)
    bhp = jax.random.uniform(k4, (CD,), jnp.float32, -bound, bound)

    # cA at depth 2 (seq len 4); details ordered fine (len 8) -> coarse (len 4)
    cA = jax.random.normal(k5, (B, 4, C, D), jnp.float32)
    details = [jax.random.normal(k6, (B, 8, C, D), jnp.float32),
               jax.random.normal(k7, (B, 4, C, D), jnp.float32)]

    out = idwt_forward(cA, details, wlp, blp, whp, bhp)
    out = jax.block_until_ready(out)
    assert out.shape == (B, 16, C, D)

    ref = _ref_forward(cA, details, wlp, blp, whp, bhp)
    # bf16 operands on the folded operators/activations -> ~0.5-1% error budget
    np.testing.assert_allclose(np.asarray(out), np.asarray(ref),
                               atol=2e-2, rtol=2e-2)
    print("KERNEL_OK")
</pallas_src>

<mosaic_0001>
module attributes {stable_mosaic.version = 11 : i64} {
  func.func @kernel(%arg0: memref<2x128xbf16, #tpu.memory_space<vmem>>, %arg1: memref<2x128xbf16, #tpu.memory_space<vmem>>, %arg2: memref<256x256xbf16, #tpu.memory_space<vmem>>, %arg3: memref<1x256xf32, #tpu.memory_space<vmem>>, %arg4: memref<2x256xbf16, #tpu.memory_space<vmem>>, %arg5: memref<512x512xbf16, #tpu.memory_space<vmem>>, %arg6: memref<1x512xf32, #tpu.memory_space<vmem>>, %arg7: memref<2x512xf32, #tpu.memory_space<vmem>>) attributes {dimension_semantics = [], scalar_prefetch = 0 : i64, scratch_operands = 0 : i64, tpu.core_type = #tpu.core_type<tc>} {
    %c0 = arith.constant 0 : index
    %c0_0 = arith.constant 0 : index
    %0 = vector.load %arg0[%c0, %c0_0] : memref<2x128xbf16, #tpu.memory_space<vmem>>, vector<2x128xbf16>
    %c0_1 = arith.constant 0 : index
    %c0_2 = arith.constant 0 : index
    %1 = vector.load %arg1[%c0_1, %c0_2] : memref<2x128xbf16, #tpu.memory_space<vmem>>, vector<2x128xbf16>
    %2 = tpu.concatenate %0, %1 in 1 : vector<2x128xbf16>, vector<2x128xbf16> -> vector<2x256xbf16>
    %c0_3 = arith.constant 0 : index
    %c0_4 = arith.constant 0 : index
    %3 = vector.load %arg2[%c0_3, %c0_4] : memref<256x256xbf16, #tpu.memory_space<vmem>>, vector<256x256xbf16>
    %cst = arith.constant dense<0.000000e+00> : vector<2x256xf32>
    %4 = tpu.matmul %2, %3, %cst {dimension_numbers = #tpu.dot_dimension_numbers<[1], [0], [0], [1], [0, 0, 1, 1], [], []>} : vector<2x256xbf16>, vector<256x256xbf16>, vector<2x256xf32> -> vector<2x256xf32>
    %c0_5 = arith.constant 0 : index
    %c0_6 = arith.constant 0 : index
    %5 = vector.load %arg3[%c0_5, %c0_6] : memref<1x256xf32, #tpu.memory_space<vmem>>, vector<1x256xf32>
    %6 = vector.broadcast %5 : vector<1x256xf32> to vector<2x256xf32>
    %7 = arith.addf %4, %6 : vector<2x256xf32>
    %8 = vector.shape_cast %7 : vector<2x256xf32> to vector<1x2x256xf32>
    %cst_7 = arith.constant dense<0.000000e+00> : vector<1xf32>
    %9 = vector.multi_reduction <add>, %8, %cst_7 [1, 2] : vector<1x2x256xf32> to vector<1xf32>
    %10 = vector.shape_cast %9 : vector<1xf32> to vector<1x1x1xf32>
    %11 = vector.extract %10[0, 0, 0] : f32 from vector<1x1x1xf32>
    %12 = arith.mulf %7, %7 : vector<2x256xf32>
    %13 = vector.shape_cast %12 : vector<2x256xf32> to vector<1x2x256xf32>
    %cst_8 = arith.constant dense<0.000000e+00> : vector<1xf32>
    %14 = vector.multi_reduction <add>, %13, %cst_8 [1, 2] : vector<1x2x256xf32> to vector<1xf32>
    %15 = vector.shape_cast %14 : vector<1xf32> to vector<1x1x1xf32>
    %16 = vector.extract %15[0, 0, 0] : f32 from vector<1x1x1xf32>
    %17 = arith.mulf %11, %11 : f32
    %cst_9 = arith.constant 5.120000e+02 : f32
    %18 = arith.divf %17, %cst_9 : f32
    %19 = arith.subf %16, %18 : f32
    %cst_10 = arith.constant 5.110000e+02 : f32
    %20 = arith.divf %19, %cst_10 : f32
    %21 = math.rsqrt %20 : f32
    %22 = vector.broadcast %21 : f32 to vector<2x256xf32>
    %23 = arith.mulf %7, %22 : vector<2x256xf32>
    %24 = arith.truncf %23 : vector<2x256xf32> to vector<2x256xbf16>
    %c0_11 = arith.constant 0 : index
    %c0_12 = arith.constant 0 : index
    %25 = vector.load %arg4[%c0_11, %c0_12] : memref<2x256xbf16, #tpu.memory_space<vmem>>, vector<2x256xbf16>
    %26 = tpu.concatenate %24, %25 in 1 : vector<2x256xbf16>, vector<2x256xbf16> -> vector<2x512xbf16>
    %c0_13 = arith.constant 0 : index
    %c0_14 = arith.constant 0 : index
    %27 = vector.load %arg5[%c0_13, %c0_14] : memref<512x512xbf16, #tpu.memory_space<vmem>>, vector<512x512xbf16>
    %cst_15 = arith.constant dense<0.000000e+00> : vector<2x512xf32>
    %28 = tpu.matmul %26, %27, %cst_15 {dimension_numbers = #tpu.dot_dimension_numbers<[1], [0], [0], [1], [0, 0, 1, 1], [], []>} : vector<2x512xbf16>, vector<512x512xbf16>, vector<2x512xf32> -> vector<2x512xf32>
    %c0_16 = arith.constant 0 : index
    %c0_17 = arith.constant 0 : index
    %29 = vector.load %arg6[%c0_16, %c0_17] : memref<1x512xf32, #tpu.memory_space<vmem>>, vector<1x512xf32>
    %30 = vector.broadcast %29 : vector<1x512xf32> to vector<2x512xf32>
    %31 = arith.addf %28, %30 : vector<2x512xf32>
    %32 = vector.shape_cast %31 : vector<2x512xf32> to vector<1x2x512xf32>
    %cst_18 = arith.constant dense<0.000000e+00> : vector<1xf32>
    %33 = vector.multi_reduction <add>, %32, %cst_18 [1, 2] : vector<1x2x512xf32> to vector<1xf32>
    %34 = vector.shape_cast %33 : vector<1xf32> to vector<1x1x1xf32>
    %35 = vector.extract %34[0, 0, 0] : f32 from vector<1x1x1xf32>
    %36 = arith.mulf %31, %31 : vector<2x512xf32>
    %37 = vector.shape_cast %36 : vector<2x512xf32> to vector<1x2x512xf32>
    %cst_19 = arith.constant dense<0.000000e+00> : vector<1xf32>
    %38 = vector.multi_reduction <add>, %37, %cst_19 [1, 2] : vector<1x2x512xf32> to vector<1xf32>
    %39 = vector.shape_cast %38 : vector<1xf32> to vector<1x1x1xf32>
    %40 = vector.extract %39[0, 0, 0] : f32 from vector<1x1x1xf32>
    %41 = arith.mulf %35, %35 : f32
    %cst_20 = arith.constant 1.024000e+03 : f32
    %42 = arith.divf %41, %cst_20 : f32
    %43 = arith.subf %40, %42 : f32
    %cst_21 = arith.constant 1.023000e+03 : f32
    %44 = arith.divf %43, %cst_21 : f32
    %45 = math.rsqrt %44 : f32
    %46 = vector.broadcast %45 : f32 to vector<2x512xf32>
    %47 = arith.mulf %31, %46 : vector<2x512xf32>
    %c0_22 = arith.constant 0 : index
    %c0_23 = arith.constant 0 : index
    %48 = vector.load %arg7[%c0_22, %c0_23] : memref<2x512xf32, #tpu.memory_space<vmem>>, vector<2x512xf32>
    tpu.vector_store %arg7[%c0_22, %c0_23], %47 {strides = array<i32>} : memref<2x512xf32, #tpu.memory_space<vmem>>, vector<2x512xf32>,
    return
  }
}

</mosaic_0001>

<bundles_post_ra>
// kernel: tpu_custom_call.1
= control target key start
LH: loop header
LB: loop body
LE: loop exit
PB: predicated region body
PF: predicated region fallthrough
CT: control target
= control target key end

     0   :  { %12 = vsyncpa [#allocation3], 0  ;;  %s2733_s0 = inlined_call_operand.hbm [shape: bf16[2,128], index: 0, kind: input, shape index: {}]   ;;  %s2734_s1 = inlined_call_operand.hbm [shape: bf16[2,128], index: 1, kind: input, shape index: {}]   ;;  %s2735_s2 = inlined_call_operand.hbm [shape: bf16[256,256], index: 2, kind: input, shape index: {}]   ;;  %s2736_s3 = inlined_call_operand.hbm [shape: f32[1,256], index: 3, kind: input, shape index: {}]   ;;  %s2737_s4 = inlined_call_operand.hbm [shape: bf16[2,256], index: 4, kind: input, shape index: {}]   ;;  %s2738_s5 = inlined_call_operand.hbm [shape: bf16[512,512], index: 5, kind: input, shape index: {}]   ;;  %s2739_s6 = inlined_call_operand.vmem [shape: f32[1,512], index: 6, kind: input, shape index: {}]   ;;  %s2740_s7 = inlined_call_operand.hbm [shape: f32[2,512], index: 7, kind: output, shape index: {}]  }
   0x1   :  { %13 = vsyncpa [#allocation6], 0 }
   0x2   :  { %14 = vsyncpa [#allocation9], 0 }
   0x3   :  { %15 = vsyncpa [#allocation12], 0  ;;  %s33_s26 = sshll.u32 %s2734_s1, 4  ;;  %s34_s26 = int_to_ptr.hbm [resolvable:$true] %s33_s26 }
   0x4   :  { %16 = vsyncpa [#allocation4], 0  ;;  %s2560_s27 = smov [#allocation5]   ;;  %s57_s8 = sshll.u32 %s2736_s3, 4  ;;  %s58_s8 = int_to_ptr.hbm [resolvable:$true] %s57_s8 }
   0x5   :  { %s35_s28 = sshll.u32 %s2560_s27, 4  ;;  %s2561_s9 = smov [#allocation8]   ;;  %s36_s28 = int_to_ptr.vmem [resolvable:$true] %s35_s28 }
   0x6   :  { %38 = dma.hbm_to_vmem [thread:$0]  %s34_s26, 16, %s36_s28, [#allocation6]  }
   0x7   :  { %s59_s10 = sshll.u32 %s2561_s9, 4  ;;  %s22_s13 = sshll.u32 %s2733_s0, 4  ;;  %s60_s10 = int_to_ptr.vmem [resolvable:$true] %s59_s10  ;;  %s23_s13 = int_to_ptr.hbm [resolvable:$true] %s22_s13 }
   0x8   :  { %62 = dma.hbm_to_vmem [thread:$0]  %s58_s8, 32, %s60_s10, [#allocation9]  }
   0x9   :  { %s43_s15 = sshll.u32 %s2735_s2, 4  ;;  %s2562_s16 = smov [#allocation2]   ;;  %s44_s15 = int_to_ptr.hbm [resolvable:$true] %s43_s15 }
   0xa   :  { %s24_s17 = sshll.u32 %s2562_s16, 4  ;;  %s2563_s3 = smov [#allocation7]   ;;  %s25_s17 = int_to_ptr.vmem [resolvable:$true] %s24_s17 }
   0xb   :  { %27 = dma.hbm_to_vmem [thread:$0]  %s23_s13, 16, %s25_s17, [#allocation3]  }
   0xc   :  { %s45_s18 = sshll.u32 %s2563_s3, 4  ;;  %s2564_s19 = smov 128   ;;  %s46_s18 = int_to_ptr.vmem [resolvable:$true] %s45_s18 }
   0xd   :  { %s2565_s20 = smov 8   ;;  %s68_s22 = sshll.u32 %s2737_s4, 4  ;;  %s69_s22 = int_to_ptr.hbm [resolvable:$true] %s68_s22 }
   0xe   :  { %51 = dma.hbm_to_vmem [thread:$0]  %s44_s15, 4096, %s46_s18, [#allocation6], %s2564_s19, %s2564_s19, %s2565_s20  }
   0xf   :  { %s2566_s23 = smov [#allocation10]   ;;  %s78_s26 = sshll.u32 %s2738_s5, 4  ;;  %s79_s26 = int_to_ptr.hbm [resolvable:$true] %s78_s26 }
  0x10   :  { %s70_s24 = sshll.u32 %s2566_s23, 4  ;;  %s2567_s27 = smov [#allocation11]   ;;  %s71_s24 = int_to_ptr.vmem [resolvable:$true] %s70_s24 }
  0x11   :  { %73 = dma.hbm_to_vmem [thread:$0]  %s69_s22, 32, %s71_s24, [#allocation9]  }
  0x12   :  { %s80_s28 = sshll.u32 %s2567_s27, 4  ;;  %s2568_s29 = smov 256   ;;  %s81_s28 = int_to_ptr.vmem [resolvable:$true] %s80_s28 }
  0x13   :  { %s2569_s30 = smov 16  }
  0x14   :  { %86 = dma.hbm_to_vmem [thread:$0]  %s79_s26, 16384, %s81_s28, [#allocation12], %s2568_s29, %s2568_s29, %s2569_s30  }
  0x15   :  { %2550 = dma.done.wait [#allocation3], 16  }
  0x16   :  { %2551 = vsyncadd [#allocation3], 4294967280 }
  0x17   :  { %2552 = dma.done.wait [#allocation6], 4112  }
  0x18   :  { %2553 = vsyncadd [#allocation6], 4294963184 }
  0x19   :  { %2554 = dma.done.wait [#allocation9], 64  }
  0x1a   :  { %2555 = vsyncadd [#allocation9], 4294967232 }
  0x1b   :  { %2556 = dma.done.wait [#allocation12], 16384  }
  0x1c   :  { %2557 = vsyncadd [#allocation12], 4294950912  ;;  %v1593_v0 = vld [vmem:[#allocation7 + $0x70] sm:$0xf]  ;;  %v2190_v1 = vld [vmem:[#allocation7 + $0x74] sm:$0xf0] }
  0x1d   :  { %v1657_v2 = vld [vmem:[#allocation7 + $0xf0] sm:$0xf]  ;;  %v1594_v3 = vor.u32 %v2190_v1, %v1593_v0  ;;  %v2206_v4 = vld [vmem:[#allocation7 + $0xf4] sm:$0xf0]  ;;  %v2189_v5 = vld [vmem:[#allocation7 + $0x74] sm:$0xf] }
  0x1e   :  { %v1595_v6 = vld [vmem:[#allocation7 + $0x78] sm:$0xf0]  ;;  %v1658_v7 = vor.u32 %v2206_v4, %v1657_v2  ;;  %v2205_v9 = vld [vmem:[#allocation7 + $0xf4] sm:$0xf]  ;;  %v1585_v11 = vld [vmem:[#allocation7 + $0x60] sm:$0xf] }
  0x1f   :  { %v1598_v8 = vor.u32 %v2189_v5, %v1595_v6  ;;  %v1659_v10 = vld [vmem:[#allocation7 + $0xf8] sm:$0xf0]  ;;  %313 = vmatpush.bf16.msra.mxu0 %v1594_v3  ;;  %v2188_v13 = vld [vmem:[#allocation7 + $0x64] sm:$0xf0]  ;;  %v1649_v14 = vld [vmem:[#allocation7 + $0xe0] sm:$0xf] }
  0x20   :  { %v1662_v12 = vor.u32 %v2205_v9, %v1659_v10  ;;  %v2204_v15 = vld [vmem:[#allocation7 + $0xe4] sm:$0xf0]  ;;  %326 = vmatpush.bf16.msra.mxu1 %v1658_v7  ;;  %v1586_v16 = vor.u32 %v2188_v13, %v1585_v11  ;;  %v2187_v18 = vld [vmem:[#allocation7 + $0x64] sm:$0xf]  ;;  %v1587_v19 = vld [vmem:[#allocation7 + $0x68] sm:$0xf0] }
  0x21   :  { %339 = vmatpush.bf16.msra.mxu2 %v1598_v8  ;;  %v1650_v17 = vor.u32 %v2204_v15, %v1649_v14  ;;  %v2203_v20 = vld [vmem:[#allocation7 + $0xe4] sm:$0xf]  ;;  %v1590_v21 = vor.u32 %v2187_v18, %v1587_v19  ;;  %v1651_v22 = vld [vmem:[#allocation7 + $0xe8] sm:$0xf0]  ;;  %v1577_v23 = vld [vmem:[#allocation7 + $0x50] sm:$0xf] }
  0x22   :  { %352 = vmatpush.bf16.msra.mxu3 %v1662_v12  ;;  %v2186_v24 = vld [vmem:[#allocation7 + $0x54] sm:$0xf0]  ;;  %v1654_v25 = vor.u32 %v2203_v20, %v1651_v22  ;;  %v1641_v26 = vld [vmem:[#allocation7 + $0xd0] sm:$0xf]  ;;  %v2185_v28 = vld [vmem:[#allocation7 + $0x54] sm:$0xf] }
  0x23   :  { %v2202_v27 = vld [vmem:[#allocation7 + $0xd4] sm:$0xf0]  ;;  %314 = vmatpush.bf16.msra.mxu0 %v1586_v16  ;;  %v1578_v29 = vor.u32 %v2186_v24, %v1577_v23  ;;  %v1579_v30 = vld [vmem:[#allocation7 + $0x58] sm:$0xf0]  ;;  %v2201_v31 = vld [vmem:[#allocation7 + $0xd4] sm:$0xf] }
  0x24   :  { %v1643_v32 = vld [vmem:[#allocation7 + $0xd8] sm:$0xf0]  ;;  %327 = vmatpush.bf16.msra.mxu1 %v1650_v17  ;;  %v1642_v33 = vor.u32 %v2202_v27, %v1641_v26  ;;  %v1582_v34 = vor.u32 %v2185_v28, %v1579_v30  ;;  %v1569_v35 = vld [vmem:[#allocation7 + $0x40] sm:$0xf]  ;;  %v2184_v36 = vld [vmem:[#allocation7 + $0x44] sm:$0xf0] }
  0x25   :  { %340 = vmatpush.bf16.msra.mxu2 %v1590_v21  ;;  %v1633_v37 = vld [vmem:[#allocation7 + $0xc0] sm:$0xf]  ;;  %v1646_v38 = vor.u32 %v2201_v31, %v1643_v32  ;;  %v2200_v39 = vld [vmem:[#allocation7 + $0xc4] sm:$0xf0]  ;;  %v2183_v40 = vld [vmem:[#allocation7 + $0x44] sm:$0xf]  ;;  %v1570_v44 = vor.u32 %v2184_v36, %v1569_v35 }
  0x26   :  { %353 = vmatpush.bf16.msra.mxu3 %v1654_v25  ;;  %v1571_v41 = vld [vmem:[#allocation7 + $0x48] sm:$0xf0]  ;;  %v2199_v42 = vld [vmem:[#allocation7 + $0xc4] sm:$0xf]  ;;  %v1634_v45 = vor.u32 %v2200_v39, %v1633_v37  ;;  %v1561_v47 = vld [vmem:[#allocation7 + $0x30] sm:$0xf] }
  0x27   :  { %v1635_v43 = vld [vmem:[#allocation7 + $0xc8] sm:$0xf0]  ;;  %315 = vmatpush.bf16.msra.mxu0 %v1578_v29  ;;  %v1574_v46 = vor.u32 %v2183_v40, %v1571_v41  ;;  %v2182_v48 = vld [vmem:[#allocation7 + $0x34] sm:$0xf0]  ;;  %v1625_v49 = vld [vmem:[#allocation7 + $0xb0] sm:$0xf] }
  0x28   :  { %328 = vmatpush.bf16.msra.mxu1 %v1642_v33  ;;  %v1638_v50 = vor.u32 %v2199_v42, %v1635_v43  ;;  %v2198_v51 = vld [vmem:[#allocation7 + $0xb4] sm:$0xf0]  ;;  %v2181_v52 = vld [vmem:[#allocation7 + $0x34] sm:$0xf]  ;;  %v1563_v53 = vld [vmem:[#allocation7 + $0x38] sm:$0xf0]  ;;  %v1562_v56 = vor.u32 %v2182_v48, %v1561_v47 }
  0x29   :  { %341 = vmatpush.bf16.msra.mxu2 %v1582_v34  ;;  %v2197_v54 = vld [vmem:[#allocation7 + $0xb4] sm:$0xf]  ;;  %v1627_v55 = vld [vmem:[#allocation7 + $0xb8] sm:$0xf0]  ;;  %v1626_v57 = vor.u32 %v2198_v51, %v1625_v49  ;;  %v1566_v58 = vor.u32 %v2181_v52, %v1563_v53  ;;  %v1553_v59 = vld [vmem:[#allocation7 + $0x20] sm:$0xf] }
  0x2a   :  { %354 = vmatpush.bf16.msra.mxu3 %v1646_v38  ;;  %v2180_v60 = vld [vmem:[#allocation7 + $0x24] sm:$0xf0]  ;;  %v1617_v61 = vld [vmem:[#allocation7 + $0xa0] sm:$0xf]  ;;  %v1630_v62 = vor.u32 %v2197_v54, %v1627_v55  ;;  %v2179_v0 = vld [vmem:[#allocation7 + $0x24] sm:$0xf] }
  0x2b   :  { %316 = vmatpush.bf16.msra.mxu0 %v1570_v44  ;;  %v2196_v63 = vld [vmem:[#allocation7 + $0xa4] sm:$0xf0]  ;;  %v1555_v1 = vld [vmem:[#allocation7 + $0x28] sm:$0xf0]  ;;  %v2195_v2 = vld [vmem:[#allocation7 + $0xa4] sm:$0xf]  ;;  %v1554_v4 = vor.u32 %v2180_v60, %v1553_v59 }
  0x2c   :  { %329 = vmatpush.bf16.msra.mxu1 %v1634_v45  ;;  %v1619_v3 = vld [vmem:[#allocation7 + $0xa8] sm:$0xf0]  ;;  %v1618_v5 = vor.u32 %v2196_v63, %v1617_v61  ;;  %v1558_v6 = vor.u32 %v2179_v0, %v1555_v1  ;;  %v1545_v7 = vld [vmem:[#allocation7 + $0x10] sm:$0xf]  ;;  %v2178_v8 = vld [vmem:[#allocation7 + $0x14] sm:$0xf0] }
  0x2d   :  { %342 = vmatpush.bf16.msra.mxu2 %v1574_v46  ;;  %v1609_v9 = vld [vmem:[#allocation7 + $0x90] sm:$0xf]  ;;  %v1622_v10 = vor.u32 %v2195_v2, %v1619_v3  ;;  %v2194_v11 = vld [vmem:[#allocation7 + $0x94] sm:$0xf0]  ;;  %v2177_v12 = vld [vmem:[#allocation7 + $0x14] sm:$0xf]  ;;  %v1546_v16 = vor.u32 %v2178_v8, %v1545_v7 }
  0x2e   :  { %355 = vmatpush.bf16.msra.mxu3 %v1638_v50  ;;  %v1547_v13 = vld [vmem:[#allocation7 + $0x18] sm:$0xf0]  ;;  %v2193_v14 = vld [vmem:[#allocation7 + $0x94] sm:$0xf]  ;;  %v1610_v17 = vor.u32 %v2194_v11, %v1609_v9  ;;  %v1537_v19 = vld [vmem:[#allocation7] sm:$0xf] }
  0x2f   :  { %317 = vmatpush.bf16.msra.mxu0 %v1562_v56  ;;  %v1611_v15 = vld [vmem:[#allocation7 + $0x98] sm:$0xf0]  ;;  %v1550_v18 = vor.u32 %v2177_v12, %v1547_v13  ;;  %v2176_v20 = vld [vmem:[#allocation7 + $0x4] sm:$0xf0]  ;;  %v1601_v21 = vld [vmem:[#allocation7 + $0x80] sm:$0xf] }
  0x30   :  { %330 = vmatpush.bf16.msra.mxu1 %v1626_v57  ;;  %v1614_v22 = vor.u32 %v2193_v14, %v1611_v15  ;;  %v2192_v23 = vld [vmem:[#allocation7 + $0x84] sm:$0xf0]  ;;  %v2175_v24 = vld [vmem:[#allocation7 + $0x4] sm:$0xf]  ;;  %v1539_v25 = vld [vmem:[#allocation7 + $0x8] sm:$0xf0]  ;;  %v1538_v28 = vor.u32 %v2176_v20, %v1537_v19 }
  0x31   :  { %343 = vmatpush.bf16.msra.mxu2 %v1566_v58  ;;  %v2191_v26 = vld [vmem:[#allocation7 + $0x84] sm:$0xf]  ;;  %v1603_v27 = vld [vmem:[#allocation7 + $0x88] sm:$0xf0]  ;;  %v1602_v29 = vor.u32 %v2192_v23, %v1601_v21  ;;  %v1542_v30 = vor.u32 %v2175_v24, %v1539_v25  ;;  %v113_v32 = vld [vmem:[#allocation2] sm:$0x1] }
  0x32   :  { %356 = vmatpush.bf16.msra.mxu3 %v1630_v62  ;;  %v1606_v31 = vor.u32 %v2191_v26, %v1603_v27  ;;  %v114_v33 = vld [vmem:[#allocation5] sm:$0x1]  ;;  %v147_v34 = vld [vmem:[#allocation8] sm:$0x3]  ;;  %vm365_vm0 = vcmask 1041408   ;;  %v2570_v57 = vmov 512.0  }
  0x33   :  { %318 = vmatpush.bf16.msra.mxu0 %v1554_v4  ;;  %v149_v35 = vperm.slane %v147_v34, 0  ;;  %v150_v39 = vperm.slane %v147_v34, 1  ;;  %2370 = vrcp.f32 %v2570_v57  ;;  %v2571_v58 = vmov 511.0   ;;  %v2033_v21 = vld [vmem:[#allocation11 + $0x2e0] sm:$0xf]  ;;  %s2574_s22 = smov [#allocation13]  }
  0x34   :  { %331 = vmatpush.bf16.msra.mxu1 %v1618_v5  ;;  %2372 = vrcp.f32 %v2571_v58  ;;  %v2161_v24 = vld [vmem:[#allocation11 + $0x3e0] sm:$0xf]  ;;  %v2333_v25 = vld [vmem:[#allocation11 + $0x3ec] sm:$0xf0]  ;;  %vm1509_vm11 = vcmask 1045508   ;;  %vm1511_vm12 = vcmask 1043456  }
  0x35   :  { %344 = vmatpush.bf16.msra.mxu2 %v1558_v6  ;;  %v2162_v26 = vor.u32 %v2333_v25, %v2161_v24  ;;  %v2017_v27 = vld [vmem:[#allocation11 + $0x2c0] sm:$0xf]  ;;  %v2293_v34 = vld [vmem:[#allocation11 + $0x2ac] sm:$0xf0]  ;;  %s1520_s23 = sshll.u32 %s2574_s22, 4  ;;  %s1522_s25 = sshll.u32 %s2740_s7, 4  ;;  %s1521_s23 = int_to_ptr.vmem [resolvable:$true] %s1520_s23  ;;  %s1523_s25 = int_to_ptr.hbm [resolvable:$true] %s1522_s25 }
  0x36   :  { %357 = vmatpush.bf16.msra.mxu3 %v1622_v10  ;;  %v2321_v57 = vld [vmem:[#allocation11 + $0x38c] sm:$0xf0]  ;;  %v1969_v58 = vld [vmem:[#allocation11 + $0x260] sm:$0xf] }
  0x37   :  { %319 = vmatpush.bf16.msra.mxu0 %v1546_v16  ;;  %v2253_v25 = vld [vmem:[#allocation11 + $0x16c] sm:$0xf0] }
  0x38   :  { %332 = vmatpush.bf16.msra.mxu1 %v1610_v17 }
  0x39   :  { %345 = vmatpush.bf16.msra.mxu2 %v1550_v18  ;;  %v2371_v59 = vpop.eup %2370 }
  0x3a   :  { %358 = vmatpush.bf16.msra.mxu3 %v1614_v22  ;;  %v2373_v61 = vpop.eup %2372  ;;  %v394_v0 = vmul.f32 512.0, %v2371_v59  ;;  %vm398_vm1 = vweird.f32 %v2371_v59  ;;  %v2301_v22 = vld [vmem:[#allocation11 + $0x2ec] sm:$0xf0] }
  0x3b   :  { %320 = vmatpush.bf16.msra.mxu0 %v1538_v28  ;;  %v404_v1 = vmul.f32 511.0, %v2373_v61  ;;  %vm408_vm2 = vweird.f32 %v2373_v61  ;;  %v2034_v23 = vor.u32 %v2301_v22, %v2033_v21  ;;  %v2297_v28 = vld [vmem:[#allocation11 + $0x2cc] sm:$0xf0]  ;;  %v1713_v21 = vld [vmem:[#allocation11 + $0x60] sm:$0xf] }
  0x3c   :  { %333 = vmatpush.bf16.msra.mxu1 %v1602_v29  ;;  %v395_v4 = vsub.f32 1.0, %v394_v0  ;;  %v2018_v29 = vor.u32 %v2297_v28, %v2017_v27  ;;  %v1873_v0 = vld [vmem:[#allocation11 + $0x1a0] sm:$0xf]  ;;  %v2221_v22 = vld [vmem:[#allocation11 + $0x6c] sm:$0xf0] }
  0x3d   :  { %346 = vmatpush.bf16.msra.mxu2 %v1542_v30  ;;  %v405_v6 = vsub.f32 1.0, %v404_v1  ;;  %v2145_v30 = vld [vmem:[#allocation11 + $0x3c0] sm:$0xf]  ;;  %v2261_v1 = vld [vmem:[#allocation11 + $0x1ac] sm:$0xf0] }
  0x3e   :  { %359 = vmatpush.bf16.msra.mxu3 %v1606_v31  ;;  %321 = vmatmul.bf16.vlgmr.msra.gmra.mxu0 %v113_v32  ;;  %v396_v11 = vmul.f32 %v2371_v59, %v395_v4  ;;  %v2329_v31 = vld [vmem:[#allocation11 + $0x3cc] sm:$0xf0]  ;;  %v1921_v28 = vld [vmem:[#allocation11 + $0x200] sm:$0xf] }
  0x3f   :  { %334 = vmatmul.bf16.vlgmr.msra.gmra.mxu1 %v114_v33  ;;  %v406_v12 = vmul.f32 %v2373_v61, %v405_v6  ;;  %v2317_v4 = vld [vmem:[#allocation11 + $0x36c] sm:$0xf0] }
  0x40   :  { %347 = vmatmul.bf16.vlgmr.msra.gmra.mxu2 %v113_v32  ;;  %v397_v15 = vadd.f32 %v2371_v59, %v396_v11  ;;  %v2146_v32 = vor.u32 %v2329_v31, %v2145_v30  ;;  %v2281_v6 = vld [vmem:[#allocation11 + $0x24c] sm:$0xf0]  ;;  %v1857_v11 = vld [vmem:[#allocation11 + $0x180] sm:$0xf]  ;;  %v1714_v31 = vor.u32 %v2221_v22, %v1713_v21  ;;  %v2231_v22 = vld [vmem:[#allocation11 + $0xc4] sm:$0xf] }
  0x41   :  { %360 = vmatmul.bf16.vlgmr.msra.gmra.mxu3 %v114_v33  ;;  %v407_v16 = vadd.f32 %v2373_v61, %v406_v12  ;;  %1246 = vmatpush.bf16.msrb.mxu2 %v2034_v23  ;;  %v2001_v33 = vld [vmem:[#allocation11 + $0x2a0] sm:$0xf]  ;;  %v2309_v27 = vld [vmem:[#allocation11 + $0x32c] sm:$0xf0] }
  0x42   :  { %v399_v19 = vsel %vm398_vm1, %v2371_v59, %v397_v15  ;;  %1259 = vmatpush.bf16.msrb.mxu3 %v2162_v26  ;;  %v2313_v15 = vld [vmem:[#allocation11 + $0x34c] sm:$0xf0]  ;;  %v1841_v23 = vld [vmem:[#allocation11 + $0x160] sm:$0xf] }
  0x43   :  { %v409_v20 = vsel %vm408_vm2, %v2373_v61, %v407_v16  ;;  %v1745_v61 = vld [vmem:[#allocation11 + $0xa0] sm:$0xf] }
  0x44   :  { %v1937_v16 = vld [vmem:[#allocation11 + $0x220] sm:$0xf] }
  0x45   :  { %1247 = vmatpush.bf16.msrb.mxu2 %v2018_v29  ;;  %v2065_v26 = vld [vmem:[#allocation11 + $0x320] sm:$0xf]  ;;  %v2273_v29 = vld [vmem:[#allocation11 + $0x20c] sm:$0xf0] }
  0x46   :  { %1260 = vmatpush.bf16.msrb.mxu3 %v2146_v32  ;;  %v2299_v32 = vld [vmem:[#allocation11 + $0x2e4] sm:$0xf] }
  0xbb   :  { %v322_v36 = vpop.f32.mrf.mxu0 }
  0xbc   :  { %v335_v37 = vpop.f32.mrf.mxu1  ;;  %v323_v38 = vadd.f32 %v322_v36, %v149_v35  ;;  %v2002_v35 = vor.u32 %v2293_v34, %v2001_v33  ;;  %v1777_v36 = vld [vmem:[#allocation11 + $0xe0] sm:$0xf]  ;;  %v2035_v33 = vld [vmem:[#allocation11 + $0x2f0] sm:$0xf0]  ;;  %v1842_v34 = vor.u32 %v2253_v25, %v1841_v23 }
  0xbe   :  { %v2633_v40 = vadd.f32 %v335_v37, %v323_v38  ;;  %v2237_v37 = vld [vmem:[#allocation11 + $0xec] sm:$0xf0]  ;;  %v1905_v38 = vld [vmem:[#allocation11 + $0x1e0] sm:$0xf]  ;;  %1248 = vmatpush.bf16.msrb.mxu2 %v2002_v35  ;;  %v2066_v35 = vor.u32 %v2309_v27, %v2065_v26  ;;  %v1763_v26 = vld [vmem:[#allocation11 + $0xd0] sm:$0xf0] }
  0xbf   :  { %v2263_v27 = vld [vmem:[#allocation11 + $0x1c4] sm:$0xf] }
  0xc0   :  { %v366_v47 = vsel %vm365_vm0, %v2633_v40, 0.0  ;;  %v378_v50 = vmul.f32 %v2633_v40, %v2633_v40 }
  0xc2   :  { %v380_v54 = vsel %vm365_vm0, %v378_v50, 0.0 }
  0xc3   :  { %v348_v41 = vpop.f32.mrf.mxu2  ;;  %v324_v44 = vpop.f32.mrf.mxu0 }
  0xc4   :  { %v349_v42 = vadd.f32 %v348_v41, %v150_v39  ;;  %v361_v43 = vpop.f32.mrf.mxu3  ;;  %v337_v45 = vpop.f32.mrf.mxu1  ;;  %v1778_v39 = vor.u32 %v2237_v37, %v1777_v36  ;;  %v2269_v41 = vld [vmem:[#allocation11 + $0x1ec] sm:$0xf0]  ;;  %v1697_v36 = vld [vmem:[#allocation11 + $0x40] sm:$0xf] }
  0xc5   :  { %v1906_v44 = vor.u32 %v2269_v41, %v1905_v38  ;;  %v2217_v37 = vld [vmem:[#allocation11 + $0x4c] sm:$0xf0]  ;;  %v1825_v38 = vld [vmem:[#allocation11 + $0x140] sm:$0xf] }
  0xc6   :  { %v2635_v46 = vadd.f32 %v361_v43, %v349_v42  ;;  %v2129_v42 = vld [vmem:[#allocation11 + $0x3a0] sm:$0xf]  ;;  %v2325_v43 = vld [vmem:[#allocation11 + $0x3ac] sm:$0xf0]  ;;  %1220 = vmatpush.bf16.msrb.mxu0 %v1778_v39  ;;  %v1922_v39 = vor.u32 %v2273_v29, %v1921_v28  ;;  %v1891_v29 = vld [vmem:[#allocation11 + $0x1d0] sm:$0xf0] }
  0xc7   :  { %v2130_v45 = vor.u32 %v2325_v43, %v2129_v42  ;;  %1233 = vmatpush.bf16.msrb.mxu1 %v1906_v44  ;;  %v2249_v41 = vld [vmem:[#allocation11 + $0x14c] sm:$0xf0]  ;;  %v2049_v42 = vld [vmem:[#allocation11 + $0x300] sm:$0xf]  ;;  %v2038_v44 = vor.u32 %v2299_v32, %v2035_v33  ;;  %v2115_v32 = vld [vmem:[#allocation11 + $0x390] sm:$0xf0] }
  0xc8   :  { %v367_v48 = vsel %vm365_vm0, %v2635_v46, 0.0  ;;  %v379_v51 = vmul.f32 %v2635_v46, %v2635_v46  ;;  %v2305_v43 = vld [vmem:[#allocation11 + $0x30c] sm:$0xf0] }
  0xc9   :  { %v368_v49 = vadd.f32 %v367_v48, %v366_v47  ;;  %v1985_v47 = vld [vmem:[#allocation11 + $0x280] sm:$0xf]  ;;  %v2289_v48 = vld [vmem:[#allocation11 + $0x28c] sm:$0xf0]  ;;  %1261 = vmatpush.bf16.msrb.mxu3 %v2130_v45  ;;  %v2331_v45 = vld [vmem:[#allocation11 + $0x3e4] sm:$0xf] }
  0xca   :  { %v381_v55 = vsel %vm365_vm0, %v379_v51, 0.0  ;;  %v1986_v50 = vor.u32 %v2289_v48, %v1985_v47  ;;  %v2233_v51 = vld [vmem:[#allocation11 + $0xcc] sm:$0xf0]  ;;  %v2163_v47 = vld [vmem:[#allocation11 + $0x3f0] sm:$0xf0]  ;;  %v1698_v48 = vor.u32 %v2217_v37, %v1697_v36  ;;  %v1766_v36 = vor.u32 %v2231_v22, %v1763_v26 }
  0xcb   :  { %v350_v52 = vpop.f32.mrf.mxu2  ;;  %369 = vadd.xlane.f32.xlu0 %v368_v49  ;;  %v382_v56 = vadd.f32 %v381_v55, %v380_v54  ;;  %v1761_v49 = vld [vmem:[#allocation11 + $0xc0] sm:$0xf]  ;;  %v2051_v26 = vld [vmem:[#allocation11 + $0x310] sm:$0xf0] }
  0xcc   :  { %v363_v53 = vpop.f32.mrf.mxu3  ;;  %v1889_v52 = vld [vmem:[#allocation11 + $0x1c0] sm:$0xf]  ;;  %v1762_v54 = vor.u32 %v2233_v51, %v1761_v49  ;;  %1249 = vmatpush.bf16.msrb.mxu2 %v1986_v50  ;;  %v2295_v49 = vld [vmem:[#allocation11 + $0x2c4] sm:$0xf]  ;;  %v2019_v50 = vld [vmem:[#allocation11 + $0x2d0] sm:$0xf0]  ;;  %v1826_v51 = vor.u32 %v2249_v41, %v1825_v38  ;;  %v1894_v38 = vor.u32 %v2263_v27, %v1891_v29 }
  0xcd   :  { %v2265_v53 = vld [vmem:[#allocation11 + $0x1cc] sm:$0xf0]  ;;  %v2227_v41 = vld [vmem:[#allocation11 + $0xa4] sm:$0xf]  ;;  %v2169_v27 = vld [vmem:[#allocation11 + $0x3e8] sm:$0xf] }
  0xce   :  { %v1890_v55 = vor.u32 %v2265_v53, %v1889_v52  ;;  %1221 = vmatpush.bf16.msrb.mxu0 %v1762_v54  ;;  %v2050_v52 = vor.u32 %v2305_v43, %v2049_v42  ;;  %v1681_v53 = vld [vmem:[#allocation11 + $0x20] sm:$0xf]  ;;  %v2213_v54 = vld [vmem:[#allocation11 + $0x2c] sm:$0xf0]  ;;  %v1747_v42 = vld [vmem:[#allocation11 + $0xb0] sm:$0xf0] }
  0xd0   :  { %1234 = vmatpush.bf16.msrb.mxu1 %v1890_v55  ;;  %v2166_v55 = vor.u32 %v2331_v45, %v2163_v47  ;;  %v2315_v45 = vld [vmem:[#allocation11 + $0x364] sm:$0xf]  ;;  %v2099_v47 = vld [vmem:[#allocation11 + $0x370] sm:$0xf0] }
  0xd3   :  { %383 = vadd.xlane.f32.xlu0 %v382_v56  ;;  %v2113_v56 = vld [vmem:[#allocation11 + $0x380] sm:$0xf] }
  0xd4   :  { %v2114_v59 = vor.u32 %v2321_v57, %v2113_v56  ;;  %v1809_v56 = vld [vmem:[#allocation11 + $0x120] sm:$0xf]  ;;  %v2245_v57 = vld [vmem:[#allocation11 + $0x12c] sm:$0xf0] }
  0xd6   :  { %1262 = vmatpush.bf16.msrb.mxu3 %v2114_v59  ;;  %v2022_v59 = vor.u32 %v2295_v49, %v2019_v50  ;;  %v1955_v49 = vld [vmem:[#allocation11 + $0x250] sm:$0xf0]  ;;  %v1750_v50 = vor.u32 %v2227_v41, %v1747_v42  ;;  %v2153_v42 = vld [vmem:[#allocation11 + $0x3c8] sm:$0xf] }
  0xd7   :  { %v1811_v41 = vld [vmem:[#allocation11 + $0x130] sm:$0xf0] }
 0x13e   :  { %v370_v60 = vpop.xlane.xlu0 %369 }
 0x13f   :  { %v371_v62 = vrot.slane %v370_v60, 4 }
 0x141   :  { %v372_v63 = vadd.f32 %v371_v62, %v370_v60  ;;  %v2285_v60 = vld [vmem:[#allocation11 + $0x26c] sm:$0xf0] }
 0x142   :  { %v2229_v62 = vld [vmem:[#allocation11 + $0xac] sm:$0xf0] }
 0x143   :  { %v373_v2 = vrot.slane %v372_v63, 2 }
 0x145   :  { %v374_v3 = vadd.f32 %v373_v2, %v372_v63  ;;  %v1970_v63 = vor.u32 %v2285_v60, %v1969_v58  ;;  %v2097_v2 = vld [vmem:[#allocation11 + $0x360] sm:$0xf]  ;;  %v2327_v60 = vld [vmem:[#allocation11 + $0x3c4] sm:$0xf] }
 0x146   :  { %v384_v5 = vpop.xlane.xlu0 %383 }
 0x147   :  { %v385_v7 = vrot.slane %v384_v5, 4  ;;  %v375_v8 = vrot.slane %v374_v3, 1  ;;  %1250 = vmatpush.bf16.msrb.mxu2 %v1970_v63  ;;  %v1682_v63 = vor.u32 %v2213_v54, %v1681_v53  ;;  %v2223_v53 = vld [vmem:[#allocation11 + $0x84] sm:$0xf]  ;;  %v1731_v54 = vld [vmem:[#allocation11 + $0x90] sm:$0xf0] }
 0x149   :  { %v386_v9 = vadd.f32 %v385_v7, %v384_v5  ;;  %v376_v10 = vadd.f32 %v375_v8, %v374_v3  ;;  %v1746_v3 = vor.u32 %v2229_v62, %v1745_v61  ;;  %v1953_v5 = vld [vmem:[#allocation11 + $0x240] sm:$0xf]  ;;  %v1874_v7 = vor.u32 %v2261_v1, %v1873_v0  ;;  %v2147_v61 = vld [vmem:[#allocation11 + $0x3d0] sm:$0xf0]  ;;  %v2291_v0 = vld [vmem:[#allocation11 + $0x2a4] sm:$0xf] }
 0x14a   :  { %v2098_v8 = vor.u32 %v2317_v4, %v2097_v2  ;;  %v1954_v12 = vor.u32 %v2281_v6, %v1953_v5  ;;  %v2003_v1 = vld [vmem:[#allocation11 + $0x2b0] sm:$0xf0]  ;;  %v1665_v2 = vld [vmem:[#allocation11] sm:$0xf]  ;;  %v2209_v4 = vld [vmem:[#allocation11 + $0xc] sm:$0xf0] }
 0x14b   :  { %v387_v13 = vrot.slane %v386_v9, 2  ;;  %2335 = vpush %v376_v10  ;;  %v2225_v10 = vld [vmem:[#allocation11 + $0x8c] sm:$0xf0]  ;;  %1222 = vmatpush.bf16.msrb.mxu0 %v1746_v3  ;;  %1235 = vmatpush.bf16.msrb.mxu1 %v1874_v7  ;;  %v1810_v3 = vor.u32 %v2245_v57, %v1809_v56  ;;  %v1793_v5 = vld [vmem:[#allocation11 + $0x100] sm:$0xf] }
 0x14c   :  { %1263 = vmatpush.bf16.msrb.mxu3 %v2098_v8  ;;  %1251 = vmatpush.bf16.msrb.mxu2 %v1954_v12  ;;  %v2241_v6 = vld [vmem:[#allocation11 + $0x10c] sm:$0xf0]  ;;  %v2150_v8 = vor.u32 %v2327_v60, %v2147_v61  ;;  %v2006_v12 = vor.u32 %v2291_v0, %v2003_v1  ;;  %v1859_v57 = vld [vmem:[#allocation11 + $0x190] sm:$0xf0]  ;;  %v2275_v60 = vld [vmem:[#allocation11 + $0x224] sm:$0xf] }
 0x14d   :  { %v388_v14 = vadd.f32 %v387_v13, %v386_v9  ;;  %v1729_v9 = vld [vmem:[#allocation11 + $0x80] sm:$0xf]  ;;  %v2257_v13 = vld [vmem:[#allocation11 + $0x18c] sm:$0xf0]  ;;  %v1939_v61 = vld [vmem:[#allocation11 + $0x230] sm:$0xf0] }
 0x14f   :  { %v389_v17 = vrot.slane %v388_v14, 1 }
 0x151   :  { %v390_v18 = vadd.f32 %v389_v17, %v388_v14  ;;  %v2081_v14 = vld [vmem:[#allocation11 + $0x340] sm:$0xf]  ;;  %v2277_v17 = vld [vmem:[#allocation11 + $0x22c] sm:$0xf0] }
 0x152   :  { %v1938_v24 = vor.u32 %v2277_v17, %v1937_v16  ;;  %v1666_v17 = vor.u32 %v2209_v4, %v1665_v2  ;;  %v1715_v2 = vld [vmem:[#allocation11 + $0x70] sm:$0xf0] }
 0x153   :  { %2337 = vpush %v390_v18  ;;  %v1730_v18 = vor.u32 %v2225_v10, %v1729_v9  ;;  %v2235_v9 = vld [vmem:[#allocation11 + $0xe4] sm:$0xf]  ;;  %v1779_v10 = vld [vmem:[#allocation11 + $0xf0] sm:$0xf0] }
 0x154   :  { %2339 = vpush %v399_v19  ;;  %v1858_v19 = vor.u32 %v2257_v13, %v1857_v11  ;;  %1252 = vmatpush.bf16.msrb.mxu2 %v1938_v24  ;;  %v2267_v11 = vld [vmem:[#allocation11 + $0x1e4] sm:$0xf]  ;;  %v1907_v13 = vld [vmem:[#allocation11 + $0x1f0] sm:$0xf0]  ;;  %v1782_v21 = vor.u32 %v2235_v9, %v1779_v10 }
 0x155   :  { %2341 = vpush %v409_v20  ;;  %v2082_v20 = vor.u32 %v2313_v15, %v2081_v14  ;;  %1223 = vmatpush.bf16.msrb.mxu0 %v1730_v18  ;;  %v2323_v14 = vld [vmem:[#allocation11 + $0x3a4] sm:$0xf]  ;;  %v2131_v15 = vld [vmem:[#allocation11 + $0x3b0] sm:$0xf0]  ;;  %v1910_v24 = vor.u32 %v2267_v11, %v1907_v13 }
 0x156   :  { %1236 = vmatpush.bf16.msrb.mxu1 %v1858_v19  ;;  %v2287_v18 = vld [vmem:[#allocation11 + $0x284] sm:$0xf]  ;;  %v1987_v19 = vld [vmem:[#allocation11 + $0x290] sm:$0xf0]  ;;  %v2134_v25 = vor.u32 %v2323_v14, %v2131_v15  ;;  %v2041_v15 = vld [vmem:[#allocation11 + $0x2e8] sm:$0xf] }
 0x157   :  { %1264 = vmatpush.bf16.msrb.mxu3 %v2082_v20  ;;  %v1794_v20 = vor.u32 %v2241_v6, %v1793_v5  ;;  %v1990_v28 = vor.u32 %v2287_v18, %v1987_v19  ;;  %v1843_v4 = vld [vmem:[#allocation11 + $0x170] sm:$0xf0]  ;;  %v1942_v5 = vor.u32 %v2275_v60, %v1939_v61  ;;  %v2307_v6 = vld [vmem:[#allocation11 + $0x324] sm:$0xf]  ;;  %v2121_v61 = vld [vmem:[#allocation11 + $0x388] sm:$0xf] }
 0x158   :  { %1253 = vmatpush.bf16.msrb.mxu2 %v1922_v39  ;;  %v2271_v9 = vld [vmem:[#allocation11 + $0x204] sm:$0xf]  ;;  %v1923_v10 = vld [vmem:[#allocation11 + $0x210] sm:$0xf0] }
 0x159   :  { %1224 = vmatpush.bf16.msrb.mxu0 %v1714_v31  ;;  %v2319_v31 = vld [vmem:[#allocation11 + $0x384] sm:$0xf]  ;;  %v1926_v14 = vor.u32 %v2271_v9, %v1923_v10  ;;  %v1699_v19 = vld [vmem:[#allocation11 + $0x50] sm:$0xf0]  ;;  %v2089_v9 = vld [vmem:[#allocation11 + $0x348] sm:$0xf] }
 0x15a   :  { %1237 = vmatpush.bf16.msrb.mxu1 %v1842_v34  ;;  %v2283_v34 = vld [vmem:[#allocation11 + $0x264] sm:$0xf]  ;;  %v2118_v39 = vor.u32 %v2319_v31, %v2115_v32  ;;  %v2314_v10 = vld [vmem:[#allocation11 + $0x354] sm:$0xf0] }
 0x15b   :  { %1265 = vmatpush.bf16.msrb.mxu3 %v2066_v35  ;;  %v1971_v35 = vld [vmem:[#allocation11 + $0x270] sm:$0xf0]  ;;  %v2215_v18 = vld [vmem:[#allocation11 + $0x44] sm:$0xf] }
 0x15c   :  { %1298 = vmatpush.bf16.msra.mxu2 %v2038_v44  ;;  %v1974_v43 = vor.u32 %v2283_v34, %v1971_v35  ;;  %v1875_v44 = vld [vmem:[#allocation11 + $0x1b0] sm:$0xf0]  ;;  %v1702_v22 = vor.u32 %v2215_v18, %v1699_v19  ;;  %v2298_v34 = vld [vmem:[#allocation11 + $0x2d4] sm:$0xf0]  ;;  %v1929_v18 = vld [vmem:[#allocation11 + $0x208] sm:$0xf] }
 0x15d   :  { %1225 = vmatpush.bf16.msrb.mxu0 %v1698_v48  ;;  %v2279_v48 = vld [vmem:[#allocation11 + $0x244] sm:$0xf]  ;;  %v2274_v19 = vld [vmem:[#allocation11 + $0x214] sm:$0xf0] }
 0x15e   :  { %1238 = vmatpush.bf16.msrb.mxu1 %v1826_v51  ;;  %v1958_v56 = vor.u32 %v2279_v48, %v1955_v49  ;;  %v2207_v49 = vld [vmem:[#allocation11 + $0x4] sm:$0xf] }
 0x15f   :  { %1266 = vmatpush.bf16.msrb.mxu3 %v2050_v52  ;;  %v2102_v52 = vor.u32 %v2315_v45, %v2099_v47  ;;  %v2009_v45 = vld [vmem:[#allocation11 + $0x2a8] sm:$0xf]  ;;  %v2294_v47 = vld [vmem:[#allocation11 + $0x2b4] sm:$0xf0] }
 0x160   :  { %1299 = vmatpush.bf16.msra.mxu2 %v2022_v59  ;;  %v2083_v59 = vld [vmem:[#allocation11 + $0x350] sm:$0xf0]  ;;  %v2010_v48 = vor.u32 %v2294_v47, %v2009_v45  ;;  %v2238_v47 = vld [vmem:[#allocation11 + $0xf4] sm:$0xf0] }
 0x161   :  { %1226 = vmatpush.bf16.msrb.mxu0 %v1682_v63  ;;  %v2219_v63 = vld [vmem:[#allocation11 + $0x64] sm:$0xf] }
 0x162   :  { %1239 = vmatpush.bf16.msrb.mxu1 %v1810_v3  ;;  %v2251_v3 = vld [vmem:[#allocation11 + $0x164] sm:$0xf]  ;;  %v1718_v11 = vor.u32 %v2219_v63, %v1715_v2 }
 0x163   :  { %1311 = vmatpush.bf16.msra.mxu3 %v2166_v55  ;;  %v2255_v55 = vld [vmem:[#allocation11 + $0x184] sm:$0xf] }
 0x164   :  { %1300 = vmatpush.bf16.msra.mxu2 %v2006_v12  ;;  %v1862_v0 = vor.u32 %v2255_v55, %v1859_v57  ;;  %v1846_v12 = vor.u32 %v2251_v3, %v1843_v4  ;;  %v2137_v55 = vld [vmem:[#allocation11 + $0x3a8] sm:$0xf]  ;;  %v2318_v4 = vld [vmem:[#allocation11 + $0x374] sm:$0xf0] }
 0x165   :  { %1227 = vmatpush.bf16.msrb.mxu0 %v1666_v17  ;;  %v2105_v3 = vld [vmem:[#allocation11 + $0x368] sm:$0xf] }
 0x166   :  { %1240 = vmatpush.bf16.msrb.mxu1 %v1794_v20  ;;  %v2247_v20 = vld [vmem:[#allocation11 + $0x144] sm:$0xf] }
 0x167   :  { %1312 = vmatpush.bf16.msra.mxu3 %v2150_v8  ;;  %v428_v8 = vld [vmem:[#allocation10] sm:$0x3] }
 0x168   :  { %1301 = vmatpush.bf16.msra.mxu2 %v1990_v28  ;;  %437 = vst [vmem:[#allocation1] ss:$9 sm:$0xff] %v428_v8  ;;  %v2334_v28 = vld [vmem:[#allocation11 + $0x3f4] sm:$0xf0] }
 0x169   :  { %1272 = vmatpush.bf16.msra.mxu0 %v1782_v21  ;;  %v2170_v32 = vor.u32 %v2334_v28, %v2169_v27  ;;  %v2332_v27 = vld [vmem:[#allocation11 + $0x3ec] sm:$0xf] }
 0x16a   :  { %1285 = vmatpush.bf16.msra.mxu1 %v1910_v24  ;;  %v2303_v24 = vld [vmem:[#allocation11 + $0x304] sm:$0xf] }
 0x16b   :  { %1313 = vmatpush.bf16.msra.mxu3 %v2134_v25  ;;  %v2054_v29 = vor.u32 %v2303_v24, %v2051_v26  ;;  %v2306_v26 = vld [vmem:[#allocation11 + $0x314] sm:$0xf0] }
 0x16c   :  { %1302 = vmatpush.bf16.msra.mxu2 %v1974_v43 }
 0x16d   :  { %1273 = vmatpush.bf16.msra.mxu0 %v1766_v36  ;;  %v2211_v36 = vld [vmem:[#allocation11 + $0x24] sm:$0xf] }
 0x16e   :  { %1286 = vmatpush.bf16.msra.mxu1 %v1894_v38  ;;  %v2243_v38 = vld [vmem:[#allocation11 + $0x124] sm:$0xf] }
 0x16f   :  { %1314 = vmatpush.bf16.msra.mxu3 %v2118_v39  ;;  %v2668_v21 = vld [vmem:[#allocation1] sm:$0xff]  ;;  %v2671_v31 = vld [vmem:[#allocation1 + $0x9] sm:$0xff]  ;;  %v1814_v43 = vor.u32 %v2243_v38, %v1811_v41 }
 0x170   :  { %1303 = vmatpush.bf16.msra.mxu2 %v1958_v56  ;;  %1267 = vmatmul.bf16.vlgmr.msrb.gmra.mxu3 %v2671_v31  ;;  %v2326_v56 = vld [vmem:[#allocation11 + $0x3b4] sm:$0xf0]  ;;  %v2155_v38 = vld [vmem:[#allocation11 + $0x3d8] sm:$0xf0] }
 0x171   :  { %1274 = vmatpush.bf16.msra.mxu0 %v1750_v50  ;;  %1254 = vmatmul.bf16.vlgmr.msrb.gmra.mxu2 %v2668_v21  ;;  %v1667_v50 = vld [vmem:[#allocation11 + $0x10] sm:$0xf0]  ;;  %v2138_v57 = vor.u32 %v2326_v56, %v2137_v55  ;;  %v1769_v55 = vld [vmem:[#allocation11 + $0xc8] sm:$0xf] }
 0x173   :  { %1315 = vmatpush.bf16.msra.mxu3 %v2102_v52  ;;  %v1670_v52 = vor.u32 %v2207_v49, %v1667_v50  ;;  %v2270_v49 = vld [vmem:[#allocation11 + $0x1f4] sm:$0xf0] }
 0x174   :  { %1304 = vmatpush.bf16.msra.mxu2 %v1942_v5  ;;  %v2106_v5 = vor.u32 %v2318_v4, %v2105_v3 }
 0x178   :  { %1305 = vmatpush.bf16.msra.mxu2 %v1926_v14 }
 0x17c   :  { %s2647_s4 = spop %2335 }
 0x17d   :  { %s392_s5 = smul.f32 %s2647_s4, %s2647_s4 }
 0x181   :  { %1306 = vmatmul.bf16.vlgmr.msra.gmra.mxu2 %v2668_v21 }
 0x184   :  { %s2651_s8 = spop %2337 }
 0x185   :  { %s2340_s9 = spop %2339 }
 0x186   :  { %s401_s10 = smul.f32 %s2340_s9, %s392_s5  ;;  %s2342_s11 = spop %2341 }
 0x188   :  { %s402_s12 = ssub.f32 %s2651_s8, %s401_s10 }
 0x18a   :  { %s411_s13 = smul.f32 %s2342_s11, %s402_s12 }
 0x18c   :  { %v2654_v30 = vstv %s411_s13 }
 0x18d   :  { %2374 = vrsqrt.f32 %v2654_v30  ;;  %vm419_vm4 = vweird.f32 %v2654_v30 }
 0x193   :  { %v2657_v58 = vpop.eup %2374 }
 0x194   :  { %v414_v62 = vmul.f32 %v2657_v58, %v2654_v30  ;;  %vm420_vm3 = vweird.f32 %v2657_v58  ;;  %v2259_v30 = vld [vmem:[#allocation11 + $0x1a4] sm:$0xf] }
 0x195   :  { %vm421_vm5 = vmor %vm419_vm4, %vm420_vm3  ;;  %v1878_v51 = vor.u32 %v2259_v30, %v1875_v44  ;;  %v2330_v30 = vld [vmem:[#allocation11 + $0x3d4] sm:$0xf0] }
 0x196   :  { %v415_v7 = vmul.f32 %v2657_v58, %v414_v62  ;;  %v1734_v62 = vor.u32 %v2223_v53, %v1731_v54  ;;  %v2154_v44 = vor.u32 %v2330_v30, %v2153_v42  ;;  %v1795_v53 = vld [vmem:[#allocation11 + $0x110] sm:$0xf0]  ;;  %v1785_v30 = vld [vmem:[#allocation11 + $0xe8] sm:$0xf] }
 0x197   :  { %1287 = vmatpush.bf16.msra.mxu1 %v1878_v51  ;;  %v2239_v51 = vld [vmem:[#allocation11 + $0x104] sm:$0xf] }
 0x198   :  { %v416_v16 = vmul.f32 0.5, %v415_v7  ;;  %v2067_v7 = vld [vmem:[#allocation11 + $0x330] sm:$0xf0]  ;;  %1275 = vmatpush.bf16.msra.mxu0 %v1734_v62  ;;  %v1798_v54 = vor.u32 %v2239_v51, %v1795_v53  ;;  %v2322_v62 = vld [vmem:[#allocation11 + $0x394] sm:$0xf0] }
 0x199   :  { %v2070_v13 = vor.u32 %v2307_v6, %v2067_v7  ;;  %v2122_v63 = vor.u32 %v2322_v62, %v2121_v61  ;;  %v1961_v6 = vld [vmem:[#allocation11 + $0x248] sm:$0xf]  ;;  %v2282_v7 = vld [vmem:[#allocation11 + $0x254] sm:$0xf0]  ;;  %v2324_v53 = vld [vmem:[#allocation11 + $0x3ac] sm:$0xf] }
 0x19a   :  { %v417_v23 = vsub.f32 1.5, %v416_v16  ;;  %v2302_v16 = vld [vmem:[#allocation11 + $0x2f4] sm:$0xf0]  ;;  %v1962_v8 = vor.u32 %v2282_v7, %v1961_v6  ;;  %v1897_v62 = vld [vmem:[#allocation11 + $0x1c8] sm:$0xf] }
 0x19b   :  { %1288 = vmatpush.bf16.msra.mxu1 %v1862_v0  ;;  %v2042_v17 = vor.u32 %v2302_v16, %v2041_v15  ;;  %v1977_v0 = vld [vmem:[#allocation11 + $0x268] sm:$0xf]  ;;  %v2310_v16 = vld [vmem:[#allocation11 + $0x334] sm:$0xf0]  ;;  %v2284_v7 = vld [vmem:[#allocation11 + $0x26c] sm:$0xf] }
 0x19c   :  { %v418_v33 = vmul.f32 %v2657_v58, %v417_v23  ;;  %1276 = vmatpush.bf16.msra.mxu0 %v1718_v11  ;;  %v1827_v23 = vld [vmem:[#allocation11 + $0x150] sm:$0xf0]  ;;  %v2090_v11 = vor.u32 %v2314_v10, %v2089_v9  ;;  %v2073_v15 = vld [vmem:[#allocation11 + $0x328] sm:$0xf]  ;;  %v2234_v61 = vld [vmem:[#allocation11 + $0xd4] sm:$0xf0] }
 0x19d   :  { %v1830_v25 = vor.u32 %v2247_v20, %v1827_v23  ;;  %1350 = vmatpush.bf16.msrb.mxu2 %v2042_v17  ;;  %v2074_v17 = vor.u32 %v2310_v16, %v2073_v15  ;;  %v1930_v20 = vor.u32 %v2274_v19, %v1929_v18  ;;  %v2043_v23 = vld [vmem:[#allocation11 + $0x2f8] sm:$0xf0]  ;;  %v1770_v3 = vor.u32 %v2234_v61, %v1769_v55  ;;  %v2230_v9 = vld [vmem:[#allocation11 + $0xb4] sm:$0xf0]  ;;  %v1881_v10 = vld [vmem:[#allocation11 + $0x1a8] sm:$0xf] }
 0x19e   :  { %v422_v37 = vsel %vm421_vm5, %v2657_v58, %v418_v33  ;;  %v2311_v58 = vld [vmem:[#allocation11 + $0x344] sm:$0xf]  ;;  %v2025_v33 = vld [vmem:[#allocation11 + $0x2c8] sm:$0xf]  ;;  %v2280_v19 = vld [vmem:[#allocation11 + $0x24c] sm:$0xf] }
 0x19f   :  { %2343 = vpush %v422_v37  ;;  %v2086_v1 = vor.u32 %v2311_v58, %v2083_v59  ;;  %1289 = vmatpush.bf16.msra.mxu1 %v1846_v12  ;;  %v2026_v35 = vor.u32 %v2298_v34, %v2025_v33  ;;  %v1683_v37 = vld [vmem:[#allocation11 + $0x30] sm:$0xf0]  ;;  %v1993_v58 = vld [vmem:[#allocation11 + $0x288] sm:$0xf]  ;;  %v2290_v59 = vld [vmem:[#allocation11 + $0x294] sm:$0xf0] }
 0x1a0   :  { %1277 = vmatpush.bf16.msra.mxu0 %v1702_v22  ;;  %v1686_v39 = vor.u32 %v2211_v36, %v1683_v37  ;;  %v1994_v60 = vor.u32 %v2290_v59, %v1993_v58  ;;  %v1945_v12 = vld [vmem:[#allocation11 + $0x228] sm:$0xf]  ;;  %v2300_v22 = vld [vmem:[#allocation11 + $0x2ec] sm:$0xf]  ;;  %v2027_v34 = vld [vmem:[#allocation11 + $0x2d8] sm:$0xf0] }
 0x1a1   :  { %1316 = vmatpush.bf16.msra.mxu3 %v2086_v1  ;;  %1351 = vmatpush.bf16.msrb.mxu2 %v2026_v35  ;;  %v2286_v1 = vld [vmem:[#allocation11 + $0x274] sm:$0xf0]  ;;  %v2046_v24 = vor.u32 %v2300_v22, %v2043_v23  ;;  %v2296_v33 = vld [vmem:[#allocation11 + $0x2cc] sm:$0xf]  ;;  %v1995_v58 = vld [vmem:[#allocation11 + $0x298] sm:$0xf0] }
 0x1a2   :  { %v1978_v2 = vor.u32 %v2286_v1, %v1977_v0  ;;  %v2030_v35 = vor.u32 %v2296_v33, %v2027_v34  ;;  %v2328_v37 = vld [vmem:[#allocation11 + $0x3cc] sm:$0xf]  ;;  %v2226_v22 = vld [vmem:[#allocation11 + $0x94] sm:$0xf0]  ;;  %v1865_v23 = vld [vmem:[#allocation11 + $0x188] sm:$0xf] }
 0x1a3   :  { %1290 = vmatpush.bf16.msra.mxu1 %v1830_v25  ;;  %v2057_v25 = vld [vmem:[#allocation11 + $0x308] sm:$0xf]  ;;  %v2158_v42 = vor.u32 %v2328_v37, %v2155_v38  ;;  %v2320_v1 = vld [vmem:[#allocation11 + $0x38c] sm:$0xf]  ;;  %v2254_v38 = vld [vmem:[#allocation11 + $0x174] sm:$0xf0] }
 0x1a4   :  { %1278 = vmatpush.bf16.msra.mxu0 %v1686_v39  ;;  %v2058_v28 = vor.u32 %v2306_v26, %v2057_v25  ;;  %v2312_v26 = vld [vmem:[#allocation11 + $0x34c] sm:$0xf]  ;;  %v1849_v37 = vld [vmem:[#allocation11 + $0x168] sm:$0xf]  ;;  %v2246_v61 = vld [vmem:[#allocation11 + $0x134] sm:$0xf0] }
 0x1a5   :  { %1317 = vmatpush.bf16.msra.mxu3 %v2070_v13  ;;  %1352 = vmatpush.bf16.msrb.mxu2 %v2010_v48  ;;  %v2278_v13 = vld [vmem:[#allocation11 + $0x234] sm:$0xf0]  ;;  %v1913_v48 = vld [vmem:[#allocation11 + $0x1e8] sm:$0xf]  ;;  %v2276_v34 = vld [vmem:[#allocation11 + $0x22c] sm:$0xf] }
 0x1a6   :  { %v1946_v14 = vor.u32 %v2278_v13, %v1945_v12  ;;  %v2316_v13 = vld [vmem:[#allocation11 + $0x36c] sm:$0xf]  ;;  %v1689_v55 = vld [vmem:[#allocation11 + $0x28] sm:$0xf] }
 0x1a7   :  { %1291 = vmatpush.bf16.msra.mxu1 %v1814_v43  ;;  %v2292_v43 = vld [vmem:[#allocation11 + $0x2ac] sm:$0xf] }
 0x1a8   :  { %1279 = vmatpush.bf16.msra.mxu0 %v1670_v52 }
 0x1a9   :  { %1318 = vmatpush.bf16.msra.mxu3 %v2054_v29  ;;  %1353 = vmatpush.bf16.msrb.mxu2 %v1994_v60  ;;  %v2171_v29 = vld [vmem:[#allocation11 + $0x3f8] sm:$0xf0] }
 0x1ab   :  { %1292 = vmatpush.bf16.msra.mxu1 %v1798_v54  ;;  %v1786_v54 = vor.u32 %v2238_v47, %v1785_v30  ;;  %v2272_v47 = vld [vmem:[#allocation11 + $0x20c] sm:$0xf] }
 0x1ac   :  { %1319 = vmatmul.bf16.vlgmr.msra.gmra.mxu3 %v2671_v31 }
 0x1ad   :  { %1363 = vmatpush.bf16.msrb.mxu3 %v2170_v32  ;;  %1354 = vmatpush.bf16.msrb.mxu2 %v1978_v2  ;;  %v2174_v32 = vor.u32 %v2332_v27, %v2171_v29  ;;  %v2123_v2 = vld [vmem:[#allocation11 + $0x398] sm:$0xf0] }
 0x1ae   :  { %v2126_v6 = vor.u32 %v2320_v1, %v2123_v2  ;;  %v2091_v27 = vld [vmem:[#allocation11 + $0x358] sm:$0xf0]  ;;  %v2210_v1 = vld [vmem:[#allocation11 + $0x14] sm:$0xf0]  ;;  %v1801_v2 = vld [vmem:[#allocation11 + $0x108] sm:$0xf] }
 0x1af   :  { %v2094_v33 = vor.u32 %v2312_v26, %v2091_v27  ;;  %v1867_v26 = vld [vmem:[#allocation11 + $0x198] sm:$0xf0] }
 0x1b1   :  { %1364 = vmatpush.bf16.msrb.mxu3 %v2154_v44  ;;  %1355 = vmatpush.bf16.msrb.mxu2 %v1962_v8  ;;  %v2011_v44 = vld [vmem:[#allocation11 + $0x2b8] sm:$0xf0] }
 0x1b2   :  { %v2014_v50 = vor.u32 %v2292_v43, %v2011_v44  ;;  %v1979_v8 = vld [vmem:[#allocation11 + $0x278] sm:$0xf0]  ;;  %v1850_v43 = vor.u32 %v2254_v38, %v1849_v37  ;;  %v1705_v44 = vld [vmem:[#allocation11 + $0x48] sm:$0xf]  ;;  %v2216_v37 = vld [vmem:[#allocation11 + $0x4c] sm:$0xf] }
 0x1b3   :  { %v1982_v12 = vor.u32 %v2284_v7, %v1979_v8  ;;  %v1915_v7 = vld [vmem:[#allocation11 + $0x1f8] sm:$0xf0] }
 0x1b4   :  { %v1707_v38 = vld [vmem:[#allocation11 + $0x58] sm:$0xf0] }
 0x1b5   :  { %1365 = vmatpush.bf16.msrb.mxu3 %v2138_v57  ;;  %1356 = vmatpush.bf16.msrb.mxu2 %v1946_v14  ;;  %v2288_v57 = vld [vmem:[#allocation11 + $0x28c] sm:$0xf]  ;;  %v2107_v14 = vld [vmem:[#allocation11 + $0x378] sm:$0xf0] }
 0x1b6   :  { %v1998_v0 = vor.u32 %v2288_v57, %v1995_v58  ;;  %v2110_v18 = vor.u32 %v2316_v13, %v2107_v14  ;;  %v2214_v57 = vld [vmem:[#allocation11 + $0x34] sm:$0xf0]  ;;  %v1817_v58 = vld [vmem:[#allocation11 + $0x128] sm:$0xf]  ;;  %v1771_v13 = vld [vmem:[#allocation11 + $0xd8] sm:$0xf0] }
 0x1b7   :  { %v2264_v14 = vld [vmem:[#allocation11 + $0x1cc] sm:$0xf] }
 0x1b9   :  { %1366 = vmatpush.bf16.msrb.mxu3 %v2122_v63  ;;  %1357 = vmatpush.bf16.msrb.mxu2 %v1930_v20  ;;  %v2266_v63 = vld [vmem:[#allocation11 + $0x1d4] sm:$0xf0]  ;;  %v1963_v20 = vld [vmem:[#allocation11 + $0x258] sm:$0xf0] }
 0x1ba   :  { %v1898_v4 = vor.u32 %v2266_v63, %v1897_v62  ;;  %v1966_v25 = vor.u32 %v2280_v19, %v1963_v20  ;;  %v1690_v62 = vor.u32 %v2214_v57, %v1689_v55  ;;  %v1818_v63 = vor.u32 %v2246_v61, %v1817_v58  ;;  %v1883_v19 = vld [vmem:[#allocation11 + $0x1b8] sm:$0xf0] }
 0x1bc   :  { %1358 = vmatmul.bf16.vlgmr.msrb.gmra.mxu2 %v2668_v21 }
 0x1bd   :  { %1367 = vmatpush.bf16.msrb.mxu3 %v2106_v5  ;;  %1402 = vmatpush.bf16.msra.mxu2 %v2046_v24  ;;  %v1753_v5 = vld [vmem:[#allocation11 + $0xa8] sm:$0xf]  ;;  %v2258_v24 = vld [vmem:[#allocation11 + $0x194] sm:$0xf0] }
 0x1be   :  { %v1754_v15 = vor.u32 %v2230_v9, %v1753_v5  ;;  %v1866_v29 = vor.u32 %v2258_v24, %v1865_v23  ;;  %v1787_v5 = vld [vmem:[#allocation11 + $0xf8] sm:$0xf0]  ;;  %v2224_v23 = vld [vmem:[#allocation11 + $0x8c] sm:$0xf] }
 0x1bf   :  { %v1739_v24 = vld [vmem:[#allocation11 + $0x98] sm:$0xf0] }
 0x1c0   :  { %v1742_v27 = vor.u32 %v2224_v23, %v1739_v24 }
 0x1c1   :  { %1368 = vmatpush.bf16.msrb.mxu3 %v2090_v11  ;;  %1403 = vmatpush.bf16.msra.mxu2 %v2030_v35  ;;  %v2262_v11 = vld [vmem:[#allocation11 + $0x1b4] sm:$0xf0]  ;;  %v1947_v35 = vld [vmem:[#allocation11 + $0x238] sm:$0xf0] }
 0x1c2   :  { %v1882_v16 = vor.u32 %v2262_v11, %v1881_v10 }
 0x1c5   :  { %1369 = vmatpush.bf16.msrb.mxu3 %v2074_v17  ;;  %1404 = vmatpush.bf16.msra.mxu2 %v2014_v50  ;;  %v1737_v17 = vld [vmem:[#allocation11 + $0x88] sm:$0xf] }
 0x1c6   :  { %v1833_v50 = vld [vmem:[#allocation11 + $0x148] sm:$0xf] }
 0x1c9   :  { %1370 = vmatpush.bf16.msrb.mxu3 %v2058_v28  ;;  %1405 = vmatpush.bf16.msra.mxu2 %v1998_v0  ;;  %v1738_v28 = vor.u32 %v2226_v22, %v1737_v17  ;;  %v1673_v0 = vld [vmem:[#allocation11 + $0x8] sm:$0xf]  ;;  %v1755_v17 = vld [vmem:[#allocation11 + $0xb8] sm:$0xf0] }
 0x1ca   :  { %v1674_v8 = vor.u32 %v2210_v1, %v1673_v0 }
 0x1cc   :  { %1371 = vmatmul.bf16.vlgmr.msrb.gmra.mxu3 %v2671_v31 }
 0x1cd   :  { %1415 = vmatpush.bf16.msra.mxu3 %v2174_v32  ;;  %1406 = vmatpush.bf16.msra.mxu2 %v1982_v12  ;;  %v1721_v32 = vld [vmem:[#allocation11 + $0x68] sm:$0xf]  ;;  %v2232_v12 = vld [vmem:[#allocation11 + $0xcc] sm:$0xf] }
 0x1d0   :  { %s2344_s1 = spop %2343 }
 0x1d1   :  { %v424_v36 = vstv %s2344_s1  ;;  %1416 = vmatpush.bf16.msra.mxu3 %v2158_v42  ;;  %1407 = vmatpush.bf16.msra.mxu2 %v1966_v25  ;;  %v2075_v42 = vld [vmem:[#allocation11 + $0x338] sm:$0xf0]  ;;  %v2256_v25 = vld [vmem:[#allocation11 + $0x18c] sm:$0xf] }
 0x1d2   :  { %v425_v39 = vmul.f32 %v424_v36, %v2633_v40  ;;  %v426_v41 = vmul.f32 %v424_v36, %v2635_v46  ;;  %v2139_v40 = vld [vmem:[#allocation11 + $0x3b8] sm:$0xf0]  ;;  %v1914_v46 = vor.u32 %v2270_v49, %v1913_v48  ;;  %v2222_v36 = vld [vmem:[#allocation11 + $0x74] sm:$0xf0] }
 0x1d3   :  { %v2142_v56 = vor.u32 %v2324_v53, %v2139_v40  ;;  %v1722_v30 = vor.u32 %v2222_v36, %v1721_v32  ;;  %v1931_v48 = vld [vmem:[#allocation11 + $0x218] sm:$0xf0]  ;;  %v2218_v49 = vld [vmem:[#allocation11 + $0x54] sm:$0xf0]  ;;  %v2304_v53 = vld [vmem:[#allocation11 + $0x30c] sm:$0xf] }
 0x1d4   :  { %v427_v45 = vpack.c.bf16 %v426_v41, %v425_v39  ;;  %v1950_v39 = vor.u32 %v2276_v34, %v1947_v35  ;;  %v2308_v41 = vld [vmem:[#allocation11 + $0x32c] sm:$0xf]  ;;  %v2059_v40 = vld [vmem:[#allocation11 + $0x318] sm:$0xf0] }
 0x1d5   :  { %1417 = vmatpush.bf16.msra.mxu3 %v2142_v56  ;;  %v2062_v56 = vor.u32 %v2304_v53, %v2059_v40  ;;  %v1723_v32 = vld [vmem:[#allocation11 + $0x78] sm:$0xf0] }
 0x1d6   :  { %v430_v51 = vunpack.c.l.b16 %v427_v45  ;;  %v431_v52 = vunpack.c.h.b16 %v427_v45  ;;  %v2078_v45 = vor.u32 %v2308_v41, %v2075_v42  ;;  %1408 = vmatpush.bf16.msra.mxu2 %v1950_v39  ;;  %v1851_v34 = vld [vmem:[#allocation11 + $0x178] sm:$0xf0]  ;;  %v2248_v39 = vld [vmem:[#allocation11 + $0x14c] sm:$0xf]  ;;  %v1710_v42 = vor.u32 %v2216_v37, %v1707_v38 }
 0x1d7   :  { %v1835_v41 = vld [vmem:[#allocation11 + $0x158] sm:$0xf0] }
 0x1d8   :  { %v2680_v59 = vpack.c.b16 %v430_v51, %v430_v51  ;;  %v2682_v60 = vpack.c.b16 %v431_v52, %v431_v52  ;;  %v2250_v51 = vld [vmem:[#allocation11 + $0x154] sm:$0xf0]  ;;  %v1934_v52 = vor.u32 %v2272_v47, %v1931_v48  ;;  %v1819_v47 = vld [vmem:[#allocation11 + $0x138] sm:$0xf0] }
 0x1d9   :  { %1418 = vmatpush.bf16.msra.mxu3 %v2126_v6  ;;  %v2268_v6 = vld [vmem:[#allocation11 + $0x1ec] sm:$0xf]  ;;  %v1803_v53 = vld [vmem:[#allocation11 + $0x118] sm:$0xf0] }
 0x1da   :  { %1228 = vmatmul.bf16.vlgmr.msrb.gmra.mxu0 %v2680_v59  ;;  %1241 = vmatmul.bf16.vlgmr.msrb.gmra.mxu1 %v2682_v60  ;;  %v1918_v11 = vor.u32 %v2268_v6, %v1915_v7 }
 0x1db   :  { %1324 = vmatpush.bf16.msrb.mxu0 %v1786_v54  ;;  %1337 = vmatpush.bf16.msrb.mxu1 %v1914_v46  ;;  %v1706_v54 = vor.u32 %v2218_v49, %v1705_v44  ;;  %v1834_v46 = vor.u32 %v2250_v51, %v1833_v50  ;;  %v1691_v44 = vld [vmem:[#allocation11 + $0x38] sm:$0xf0]  ;;  %v2208_v50 = vld [vmem:[#allocation11 + $0xc] sm:$0xf] }
 0x1dc   :  { %1409 = vmatpush.bf16.msra.mxu2 %v1934_v52  ;;  %v1675_v51 = vld [vmem:[#allocation11 + $0x18] sm:$0xf0]  ;;  %v2240_v52 = vld [vmem:[#allocation11 + $0x10c] sm:$0xf] }
 0x1dd   :  { %1419 = vmatpush.bf16.msra.mxu3 %v2110_v18  ;;  %v2260_v18 = vld [vmem:[#allocation11 + $0x1ac] sm:$0xf]  ;;  %v1678_v40 = vor.u32 %v2208_v50, %v1675_v51 }
 0x1de   :  { %v1886_v22 = vor.u32 %v2260_v18, %v1883_v19 }
 0x1df   :  { %1325 = vmatpush.bf16.msrb.mxu0 %v1770_v3  ;;  %1338 = vmatpush.bf16.msrb.mxu1 %v1898_v4  ;;  %v2242_v3 = vld [vmem:[#allocation11 + $0x114] sm:$0xf0]  ;;  %v2236_v4 = vld [vmem:[#allocation11 + $0xec] sm:$0xf] }
 0x1e0   :  { %1410 = vmatmul.bf16.vlgmr.msra.gmra.mxu2 %v2668_v21  ;;  %v1802_v9 = vor.u32 %v2242_v3, %v1801_v2  ;;  %v1790_v10 = vor.u32 %v2236_v4, %v1787_v5  ;;  %v1774_v21 = vor.u32 %v2232_v12, %v1771_v13 }
 0x1e1   :  { %1420 = vmatpush.bf16.msra.mxu3 %v2094_v33  ;;  %v2252_v33 = vld [vmem:[#allocation11 + $0x16c] sm:$0xf] }
 0x1e2   :  { %v1854_v36 = vor.u32 %v2252_v33, %v1851_v34 }
 0x1e3   :  { %1326 = vmatpush.bf16.msrb.mxu0 %v1754_v15  ;;  %1339 = vmatpush.bf16.msrb.mxu1 %v1882_v16  ;;  %v1899_v15 = vld [vmem:[#allocation11 + $0x1d8] sm:$0xf0] }
 0x1e4   :  { %v1902_v16 = vor.u32 %v2264_v14, %v1899_v15 }
 0x1e5   :  { %1421 = vmatpush.bf16.msra.mxu3 %v2078_v45  ;;  %v2244_v45 = vld [vmem:[#allocation11 + $0x12c] sm:$0xf] }
 0x1e6   :  { %v1822_v49 = vor.u32 %v2244_v45, %v1819_v47 }
 0x1e7   :  { %1327 = vmatpush.bf16.msrb.mxu0 %v1738_v28  ;;  %1340 = vmatpush.bf16.msrb.mxu1 %v1866_v29  ;;  %v1870_v28 = vor.u32 %v2256_v25, %v1867_v26  ;;  %v2220_v29 = vld [vmem:[#allocation11 + $0x6c] sm:$0xf] }
 0x1e8   :  { %v1726_v35 = vor.u32 %v2220_v29, %v1723_v32 }
 0x1e9   :  { %1422 = vmatpush.bf16.msra.mxu3 %v2062_v56 }
 0x1ea   :  { %1280 = vmatmul.bf16.vlgmr.msra.gmra.mxu0 %v2680_v59  ;;  %1293 = vmatmul.bf16.vlgmr.msra.gmra.mxu1 %v2682_v60 }
 0x1eb   :  { %1328 = vmatpush.bf16.msrb.mxu0 %v1722_v30  ;;  %1341 = vmatpush.bf16.msrb.mxu1 %v1850_v43  ;;  %v1838_v30 = vor.u32 %v2248_v39, %v1835_v41  ;;  %v2212_v43 = vld [vmem:[#allocation11 + $0x2c] sm:$0xf] }
 0x1ec   :  { %1423 = vmatmul.bf16.vlgmr.msra.gmra.mxu3 %v2671_v31  ;;  %v2228_v31 = vld [vmem:[#allocation11 + $0xac] sm:$0xf]  ;;  %v1694_v48 = vor.u32 %v2212_v43, %v1691_v44 }
 0x1ed   :  { %v1758_v20 = vor.u32 %v2228_v31, %v1755_v17 }
 0x1ef   :  { %1329 = vmatpush.bf16.msrb.mxu0 %v1706_v54  ;;  %1342 = vmatpush.bf16.msrb.mxu1 %v1834_v46  ;;  %v1806_v54 = vor.u32 %v2240_v52, %v1803_v53 }
 0x1f3   :  { %1330 = vmatpush.bf16.msrb.mxu0 %v1690_v62  ;;  %1343 = vmatpush.bf16.msrb.mxu1 %v1818_v63  ;;  %v1268_v55 = vpop.f32.mrf.mxu3  ;;  %v570_v62 = vld [vmem:[%s2739_s6] sm:$0xf] }
 0x1f4   :  { %v1255_v46 = vpop.f32.mrf.mxu2  ;;  %v572_v0 = vperm.slane %v570_v62, 0  ;;  %v575_v34 = vperm.slane %v570_v62, 3 }
 0x1f7   :  { %1331 = vmatpush.bf16.msrb.mxu0 %v1674_v8  ;;  %1344 = vmatpush.bf16.msrb.mxu1 %v1802_v9 }
 0x1fa   :  { %1332 = vmatmul.bf16.vlgmr.msrb.gmra.mxu0 %v2680_v59  ;;  %1345 = vmatmul.bf16.vlgmr.msrb.gmra.mxu1 %v2682_v60 }
 0x1fb   :  { %1376 = vmatpush.bf16.msra.mxu0 %v1790_v10  ;;  %1389 = vmatpush.bf16.msra.mxu1 %v1918_v11  ;;  %v1270_v57 = vpop.f32.mrf.mxu3  ;;  %v573_v11 = vperm.slane %v570_v62, 1 }
 0x1fc   :  { %v1257_v56 = vpop.f32.mrf.mxu2 }
 0x1ff   :  { %1377 = vmatpush.bf16.msra.mxu0 %v1774_v21  ;;  %1390 = vmatpush.bf16.msra.mxu1 %v1902_v16 }
 0x203   :  { %1378 = vmatpush.bf16.msra.mxu0 %v1758_v20  ;;  %1391 = vmatpush.bf16.msra.mxu1 %v1886_v22 }
 0x204   :  { %v1307_v58 = vpop.f32.mrf.mxu2 }
 0x207   :  { %1379 = vmatpush.bf16.msra.mxu0 %v1742_v27  ;;  %1392 = vmatpush.bf16.msra.mxu1 %v1870_v28  ;;  %v574_v28 = vperm.slane %v570_v62, 2 }
 0x20b   :  { %1380 = vmatpush.bf16.msra.mxu0 %v1726_v35  ;;  %1393 = vmatpush.bf16.msra.mxu1 %v1854_v36 }
 0x20c   :  { %v1309_v63 = vpop.f32.mrf.mxu2 }
 0x20d   :  { %v2572_v63 = vmov 1024.0  }
 0x20e   :  { %2376 = vrcp.f32 %v2572_v63 }
 0x20f   :  { %1381 = vmatpush.bf16.msra.mxu0 %v1710_v42  ;;  %1394 = vmatpush.bf16.msra.mxu1 %v1838_v30 }
 0x213   :  { %1382 = vmatpush.bf16.msra.mxu0 %v1694_v48  ;;  %1395 = vmatpush.bf16.msra.mxu1 %v1822_v49 }
 0x217   :  { %1383 = vmatpush.bf16.msra.mxu0 %v1678_v40  ;;  %1396 = vmatpush.bf16.msra.mxu1 %v1806_v54 }
 0x21a   :  { %1384 = vmatmul.bf16.vlgmr.msra.gmra.mxu0 %v2680_v59  ;;  %1397 = vmatmul.bf16.vlgmr.msra.gmra.mxu1 %v2682_v60 }
 0x22f   :  { %v1320_v61 = vpop.f32.mrf.mxu3 }
 0x237   :  { %v1322_v1 = vpop.f32.mrf.mxu3 }
 0x238   :  { %v2377_v1 = vpop.eup %2376 }
 0x239   :  { %vm1470_vm6 = vweird.f32 %v2377_v1 }
 0x23f   :  { %v1359_v59 = vpop.f32.mrf.mxu2 }
 0x247   :  { %v1361_v10 = vpop.f32.mrf.mxu2 }
 0x24f   :  { %v1372_v60 = vpop.f32.mrf.mxu3 }
 0x257   :  { %v1229_v2 = vpop.f32.mrf.mxu0  ;;  %v1242_v3 = vpop.f32.mrf.mxu1 }
 0x258   :  { %v1230_v4 = vadd.f32 %v1229_v2, %v572_v0  ;;  %v1374_v12 = vpop.f32.mrf.mxu3  ;;  %v2573_v0 = vmov 1023.0  }
 0x259   :  { %2378 = vrcp.f32 %v2573_v0 }
 0x25a   :  { %v1243_v5 = vadd.f32 %v1242_v3, %v1230_v4 }
 0x25c   :  { %v1256_v6 = vadd.f32 %v1255_v46, %v1243_v5 }
 0x25e   :  { %v2697_v7 = vadd.f32 %v1268_v55, %v1256_v6 }
 0x25f   :  { %v1231_v8 = vpop.f32.mrf.mxu0  ;;  %v1244_v9 = vpop.f32.mrf.mxu1 }
 0x260   :  { %v1428_v30 = vsel %vm365_vm0, %v2697_v7, 0.0  ;;  %v1444_v53 = vmul.f32 %v2697_v7, %v2697_v7  ;;  %v2379_v3 = vpop.eup %2378 }
 0x261   :  { %v1476_v6 = vmul.f32 1023.0, %v2379_v3  ;;  %vm1480_vm7 = vweird.f32 %v2379_v3 }
 0x262   :  { %v1448_v55 = vsel %vm365_vm0, %v1444_v53, 0.0 }
 0x263   :  { %v1411_v19 = vpop.f32.mrf.mxu2 }
 0x267   :  { %v1281_v13 = vpop.f32.mrf.mxu0  ;;  %v1294_v14 = vpop.f32.mrf.mxu1 }
 0x268   :  { %v1282_v15 = vadd.f32 %v1281_v13, %v573_v11  ;;  %v1477_v11 = vsub.f32 1.0, %v1476_v6 }
 0x26a   :  { %v1295_v21 = vadd.f32 %v1294_v14, %v1282_v15 }
 0x26b   :  { %v1413_v24 = vpop.f32.mrf.mxu2 }
 0x26c   :  { %v1308_v16 = vadd.f32 %v1307_v58, %v1295_v21 }
 0x26e   :  { %v2699_v31 = vadd.f32 %v1320_v61, %v1308_v16  ;;  %v1478_v16 = vmul.f32 %v2379_v3, %v1477_v11 }
 0x26f   :  { %v1283_v17 = vpop.f32.mrf.mxu0  ;;  %v1296_v18 = vpop.f32.mrf.mxu1 }
 0x270   :  { %v1424_v20 = vpop.f32.mrf.mxu3  ;;  %v1429_v41 = vsel %vm365_vm0, %v2699_v31, 0.0  ;;  %v1445_v45 = vmul.f32 %v2699_v31, %v2699_v31 }
 0x271   :  { %v1430_v44 = vadd.f32 %v1429_v41, %v1428_v30 }
 0x272   :  { %v1449_v46 = vsel %vm365_vm0, %v1445_v45, 0.0 }
 0x273   :  { %v1450_v57 = vadd.f32 %v1449_v46, %v1448_v55 }
 0x277   :  { %v1333_v22 = vpop.f32.mrf.mxu0  ;;  %v1346_v23 = vpop.f32.mrf.mxu1 }
 0x278   :  { %v1426_v25 = vpop.f32.mrf.mxu3  ;;  %v1334_v29 = vadd.f32 %v1333_v22, %v574_v28 }
 0x27a   :  { %v1347_v32 = vadd.f32 %v1346_v23, %v1334_v29 }
 0x27c   :  { %v1360_v33 = vadd.f32 %v1359_v59, %v1347_v32  ;;  %v1466_v59 = vmul.f32 1024.0, %v2377_v1 }
 0x27e   :  { %v2701_v37 = vadd.f32 %v1372_v60, %v1360_v33  ;;  %v1467_v9 = vsub.f32 1.0, %v1466_v59 }
 0x27f   :  { %v1335_v26 = vpop.f32.mrf.mxu0  ;;  %v1348_v27 = vpop.f32.mrf.mxu1 }
 0x280   :  { %v1431_v43 = vsel %vm365_vm0, %v2701_v37, 0.0  ;;  %v1446_v51 = vmul.f32 %v2701_v37, %v2701_v37  ;;  %v1468_v21 = vmul.f32 %v2377_v1, %v1467_v9 }
 0x281   :  { %v1432_v50 = vadd.f32 %v1431_v43, %v1430_v44 }
 0x282   :  { %v1451_v56 = vsel %vm365_vm0, %v1446_v51, 0.0 }
 0x283   :  { %v1452_v61 = vadd.f32 %v1451_v56, %v1450_v57 }
 0x297   :  { %v1385_v35 = vpop.f32.mrf.mxu0  ;;  %v1398_v36 = vpop.f32.mrf.mxu1 }
 0x298   :  { %v1386_v38 = vadd.f32 %v1385_v35, %v575_v34 }
 0x29a   :  { %v1399_v39 = vadd.f32 %v1398_v36, %v1386_v38 }
 0x29c   :  { %v1412_v42 = vadd.f32 %v1411_v19, %v1399_v39  ;;  %v1469_v19 = vadd.f32 %v2377_v1, %v1468_v21 }
 0x29e   :  { %v2711_v47 = vadd.f32 %v1424_v20, %v1412_v42  ;;  %v1479_v20 = vadd.f32 %v2379_v3, %v1478_v16  ;;  %v1471_v24 = vsel %vm1470_vm6, %v2377_v1, %v1469_v19 }
 0x29f   :  { %v1387_v48 = vpop.f32.mrf.mxu0  ;;  %v1400_v49 = vpop.f32.mrf.mxu1 }
 0x2a0   :  { %v1433_v52 = vsel %vm365_vm0, %v2711_v47, 0.0  ;;  %v1447_v54 = vmul.f32 %v2711_v47, %v2711_v47  ;;  %v1481_v25 = vsel %vm1480_vm7, %v2379_v3, %v1479_v20 }
 0x2a1   :  { %v1434_v40 = vadd.f32 %v1433_v52, %v1432_v50 }
 0x2a2   :  { %v1453_v58 = vsel %vm365_vm0, %v1447_v54, 0.0 }
 0x2a3   :  { %1435 = vadd.xlane.f32.xlu1 %v1434_v40  ;;  %v1454_v62 = vadd.f32 %v1453_v58, %v1452_v61 }
 0x2ab   :  { %1455 = vadd.xlane.f32.xlu1 %v1454_v62 }
 0x316   :  { %v1436_v2 = vpop.xlane.xlu1 %1435 }
 0x317   :  { %v1437_v4 = vrot.slane %v1436_v2, 4 }
 0x319   :  { %v1438_v5 = vadd.f32 %v1437_v4, %v1436_v2 }
 0x31b   :  { %v1439_v60 = vrot.slane %v1438_v5, 2 }
 0x31d   :  { %v1440_v8 = vadd.f32 %v1439_v60, %v1438_v5 }
 0x31e   :  { %v1456_v10 = vpop.xlane.xlu1 %1455 }
 0x31f   :  { %v1457_v12 = vrot.slane %v1456_v10, 4  ;;  %v1441_v13 = vrot.slane %v1440_v8, 1 }
 0x321   :  { %v1458_v14 = vadd.f32 %v1457_v12, %v1456_v10  ;;  %v1442_v15 = vadd.f32 %v1441_v13, %v1440_v8 }
 0x323   :  { %v1459_v17 = vrot.slane %v1458_v14, 2  ;;  %2345 = vpush %v1442_v15 }
 0x325   :  { %v1460_v18 = vadd.f32 %v1459_v17, %v1458_v14 }
 0x327   :  { %v1461_v22 = vrot.slane %v1460_v18, 1 }
 0x329   :  { %v1462_v23 = vadd.f32 %v1461_v22, %v1460_v18 }
 0x32b   :  { %2347 = vpush %v1462_v23 }
 0x32c   :  { %2349 = vpush %v1471_v24 }
 0x32d   :  { %2351 = vpush %v1481_v25 }
 0x354   :  { %s2346_s6 = spop %2345 }
 0x355   :  { %s1464_s16 = smul.f32 %s2346_s6, %s2346_s6 }
 0x35c   :  { %s2348_s17 = spop %2347 }
 0x35d   :  { %s2350_s3 = spop %2349 }
 0x35e   :  { %s1473_s18 = smul.f32 %s2350_s3, %s1464_s16  ;;  %s2352_s19 = spop %2351 }
 0x360   :  { %s1474_s20 = ssub.f32 %s2348_s17, %s1473_s18 }
 0x362   :  { %s1483_s21 = smul.f32 %s2352_s19, %s1474_s20 }
 0x364   :  { %v1484_v26 = vstv %s1483_s21 }
 0x365   :  { %2380 = vrsqrt.f32 %v1484_v26  ;;  %vm1491_vm9 = vweird.f32 %v1484_v26 }
 0x36b   :  { %v2381_v27 = vpop.eup %2380 }
 0x36c   :  { %v1486_v28 = vmul.f32 %v2381_v27, %v1484_v26  ;;  %vm1492_vm8 = vweird.f32 %v2381_v27 }
 0x36d   :  { %vm1493_vm10 = vmor %vm1491_vm9, %vm1492_vm8 }
 0x36e   :  { %v1487_v29 = vmul.f32 %v2381_v27, %v1486_v28 }
 0x370   :  { %v1488_v32 = vmul.f32 0.5, %v1487_v29 }
 0x372   :  { %v1489_v33 = vsub.f32 1.5, %v1488_v32 }
 0x374   :  { %v1490_v34 = vmul.f32 %v2381_v27, %v1489_v33 }
 0x376   :  { %v1494_v35 = vsel %vm1493_vm10, %v2381_v27, %v1490_v34 }
 0x377   :  { %2353 = vpush %v1494_v35 }
 0x3a8   :  { %s2354_s0 = spop %2353 }
 0x3a9   :  { %v1496_v36 = vstv %s2354_s0 }
 0x3aa   :  { %v1498_v38 = vmul.f32 %v1496_v36, %v2699_v31  ;;  %v1499_v39 = vmul.f32 %v1496_v36, %v2701_v37  ;;  %v1500_v41 = vmul.f32 %v1496_v36, %v2711_v47  ;;  %v1497_v42 = vmul.f32 %v1496_v36, %v2697_v7 }
 0x3ac   :  { %v1505_v30 = vrot.slane %v1498_v38, 6  ;;  %v1506_v43 = vrot.slane %v1499_v39, 4  ;;  %v1507_v44 = vrot.slane %v1500_v41, 2 }
 0x3ae   :  { %v1508_v45 = vsel %vm365_vm0, %v1497_v42, %v1505_v30  ;;  %v1510_v31 = vsel %vm1509_vm11, %v1506_v43, %v1507_v44 }
 0x3af   :  { %v1512_v37 = vsel %vm1511_vm12, %v1508_v45, %v1510_v31 }
 0x3b0   :  { %1514 = vst [vmem:[#allocation13] sm:$0xff] %v1512_v37 }
 0x3b1   :  { %1525 = dma.vmem_to_hbm [thread:$0]  %s1521_s23, 128, %s1523_s25, [#allocation4]  }
 0x3b2   :  { %2558 = dma.done.wait [#allocation4], 128  }
 0x3b3   :  { %2559 = vsyncadd [#allocation4], 4294967168 }
 0x3b4   :  { %1530 = vsyncpa [#allocation3], 1 }
 0x3b5   :  { %1531 = vsyncpa [#allocation6], 1 }
 0x3b6   :  { %1532 = vsyncpa [#allocation9], 1 }
 0x3b7   :  { %1533 = vsyncpa [#allocation12], 1 }
 0x3b8   :  { %1534 = vsyncpa [#allocation4], 1 }

</bundles_post_ra>
